<compile_context>
chip_gen: v7x
topology: tpu7x:2x2x1
jax: 0.10.0
libtpu: 0.0.40
codegen_flags: <defaults>
</compile_context>

<pallas_src>
import functools

import jax
import jax.numpy as jnp
from jax import lax
from jax.experimental import pallas as pl
from jax.experimental.pallas import tpu as pltpu


def _leaky_relu(x, slope=0.01):
    return jnp.where(x >= 0, x, slope * x)


def maf_kernel(p_ref, cam_ref, im_ref,
               w0_ref, b0_ref, w1a_ref, w1b_ref, b1_ref,
               w2a_ref, w2b_ref, b2_ref,
               out_ref, *, H, W):
    """Per-(batch, N-tile) kernel: projection + joint 4-hot bilinear sampling + MLP."""
    b = pl.program_id(0)
    TN = p_ref.shape[2]
    HW_pad = im_ref.shape[2]
    cdtype = im_ref.dtype                      # matmul compute dtype (bf16 or f32)

    # ---- camera scalars from SMEM -----------------------------------------------------
    s = cam_ref[b, 0]
    tx = cam_ref[b, 1]
    ty = cam_ref[b, 2]
    td = 224.0 * s + 1e-9                      # tz = 2*5000 / td

    # ---- IWP weak-perspective projection (one shared vector reciprocal) ---------------
    pt = p_ref[0]                              # (3, TN) f32
    px = pt[0:1, :]
    py = pt[1:2, :]
    pz = pt[2:3, :]
    # 1/(pz + 10000/td) == td / (pz*td + 10000)  -> a single vector divide
    inv_den = td / (pz * td + 2.0 * 5000.0)    # (1, TN)
    K = 5000.0 / (224.0 / 2.0)
    x2d = (px + tx) * inv_den * K              # normalized coords in [-1, 1]
    y2d = (py + ty) * inv_den * K

    # ---- bilinear grid_sample (align_corners=False, padding_mode='zeros') -------------
    ix = ((x2d + 1.0) * W - 1.0) * 0.5         # (1, TN) pixel coords
    iy = ((y2d + 1.0) * H - 1.0) * 0.5

    x0 = jnp.floor(ix)
    x1 = x0 + 1.0
    y0 = jnp.floor(iy)
    y1 = y0 + 1.0
    wx1 = ix - x0
    wx0 = 1.0 - wx1
    wy1 = iy - y0
    wy0 = 1.0 - wy1

    iota = lax.broadcasted_iota(jnp.int32, (HW_pad, TN), 0)

    def fourhot_term(yf, xf, wgt):
        """One corner of the bilinear stencil as a masked one-hot column (HW_pad, TN)."""
        inb = (xf >= 0.0) & (xf <= W - 1.0) & (yf >= 0.0) & (yf <= H - 1.0)   # (1, TN)
        xi = jnp.clip(xf, 0.0, W - 1.0).astype(jnp.int32)                     # clamp first
        yi = jnp.clip(yf, 0.0, H - 1.0).astype(jnp.int32)
        idx = yi * W + xi                                                     # (1, TN)
        return jnp.where((iota == idx) & inb, wgt, 0.0)

    # joint sampling matrix, built in f32, cast once for the MXU
    S = (fourhot_term(y0, x0, wy0 * wx0) + fourhot_term(y0, x1, wy0 * wx1)
         + fourhot_term(y1, x0, wy1 * wx0) + fourhot_term(y1, x1, wy1 * wx1))
    S = S.astype(cdtype)                                                      # (HW_pad, TN)

    # single contraction over the full spatial axis: (C, HW_pad) @ (HW_pad, TN)
    point_feat = jnp.dot(im_ref[0], S, preferred_element_type=jnp.float32)    # (C, TN) f32
    pf_lp = point_feat.astype(cdtype)

    # ---- reduce_dim: Conv1d(k=1) stack; skip-concat expressed as split weight blocks ---
    y = jnp.dot(w0_ref[...], pf_lp, preferred_element_type=jnp.float32) + b0_ref[...]
    y = _leaky_relu(y).astype(cdtype)
    y = (jnp.dot(w1a_ref[...], y, preferred_element_type=jnp.float32)
         + jnp.dot(w1b_ref[...], pf_lp, preferred_element_type=jnp.float32)
         + b1_ref[...])
    y = _leaky_relu(y).astype(cdtype)
    y = (jnp.dot(w2a_ref[...], y, preferred_element_type=jnp.float32)
         + jnp.dot(w2b_ref[...], pf_lp, preferred_element_type=jnp.float32)
         + b2_ref[...])
    out_ref[0] = jnp.maximum(y, 0.0)           # last_op = ReLU


def _vmem_limit_bytes(C, HW_pad, tile_n, c1, c2, c_out, feat_itemsize):
    """Conservative VMEM estimate: pipelined blocks + weights + in-kernel temporaries."""
    dbl = 2  # double-buffered pipeline blocks
    blocks = dbl * (3 * tile_n * 4                      # p tile
                    + C * HW_pad * feat_itemsize        # image block
                    + c_out * tile_n * 4)               # output tile
    weights = dbl * (feat_itemsize * (c1 * C + c2 * (c1 + C) + c_out * (c2 + C))
                     + 4 * (c1 + c2 + c_out))
    # joint 4-hot matrix (f32 build + cast), int32 iota, per-layer activations
    temps = HW_pad * tile_n * (4 + 4 + feat_itemsize) \
        + (C + c1 + c2 + c_out) * tile_n * 8
    est = blocks + weights + temps + (4 << 20)          # headroom
    return int(min(64 << 20, max(32 << 20, est)))       # stay within v7x physical VMEM


def maf_extractor_forward(p, cam, im_feat, params, tile_n=None,
                          compute_dtype=jnp.bfloat16):
    """p: [B, N, 3], cam: [B, 3], im_feat: [B, C_s, H, W] -> [B, C_p, N]."""
    B, C, H, W = im_feat.shape
    N = p.shape[1]
    HW = H * W
    HW_pad = -(-HW // 128) * 128               # lane-dense spatial axis for the image block

    # Lane tile along N: multiple of 128.  256 fills the MXU N dim on v6e/v7x; drop to
    # 128 when the joint (HW_pad, TN) temporaries would threaten v7x's 64 MiB VMEM.
    if tile_n is None:
        tile_n = 256 if N >= 256 else 128
        if HW_pad * tile_n * 12 > (24 << 20):
            tile_n = 128
    n_tiles = -(-N // tile_n)
    N_pad = n_tiles * tile_n

    p_t = jnp.transpose(p, (0, 2, 1))          # (B, 3, N)
    if N_pad != N:
        p_t = jnp.pad(p_t, ((0, 0), (0, 0), (0, N_pad - N)))
    p_t = p_t.astype(jnp.float32)

    im_flat = im_feat.reshape(B, C, HW)        # (B, C, H*W)
    if HW_pad != HW:
        im_flat = jnp.pad(im_flat, ((0, 0), (0, 0), (0, HW_pad - HW)))
    im_flat = im_flat.astype(compute_dtype)

    w0, b0, w1, b1, w2, b2 = params
    c1 = w0.shape[0]
    c2 = w1.shape[0]
    c_out = w2.shape[0]
    # split skip-concat weights into [y | point_feat] column blocks on the host
    w1a, w1b = w1[:, :c1], w1[:, c1:]
    w2a, w2b = w2[:, :c2], w2[:, c2:]
    w0c, w1ac, w1bc, w2ac, w2bc = (w.astype(compute_dtype)
                                   for w in (w0, w1a, w1b, w2a, w2b))
    b0f, b1f, b2f = (b.astype(jnp.float32) for b in (b0, b1, b2))
    # NOTE: for tiny deployments the 11 small input DMAs / per-step overhead dominate;
    # packing weights into one buffer only matters there, not at production sizes.

    kernel = functools.partial(maf_kernel, H=H, W=W)

    feat_itemsize = jnp.dtype(compute_dtype).itemsize
    vmem_limit = _vmem_limit_bytes(C, HW_pad, tile_n, c1, c2, c_out, feat_itemsize)

    grid_spec = pl.GridSpec(
        grid=(B, n_tiles),
        in_specs=[
            pl.BlockSpec((1, 3, tile_n), lambda b, n: (b, 0, n)),
            pl.BlockSpec(memory_space=pltpu.MemorySpace.SMEM),       # cam (B, 3) scalars
            pl.BlockSpec((1, C, HW_pad), lambda b, n: (b, 0, 0)),    # reused across N tiles
            pl.BlockSpec(w0c.shape, lambda b, n: (0, 0)),
            pl.BlockSpec(b0f.shape, lambda b, n: (0, 0)),
            pl.BlockSpec(w1ac.shape, lambda b, n: (0, 0)),
            pl.BlockSpec(w1bc.shape, lambda b, n: (0, 0)),
            pl.BlockSpec(b1f.shape, lambda b, n: (0, 0)),
            pl.BlockSpec(w2ac.shape, lambda b, n: (0, 0)),
            pl.BlockSpec(w2bc.shape, lambda b, n: (0, 0)),
            pl.BlockSpec(b2f.shape, lambda b, n: (0, 0)),
        ],
        out_specs=pl.BlockSpec((1, c_out, tile_n), lambda b, n: (b, 0, n)),
    )

    out = pl.pallas_call(
        kernel,
        out_shape=jax.ShapeDtypeStruct((B, c_out, N_pad), jnp.float32),
        grid_spec=grid_spec,
        compiler_params=pltpu.CompilerParams(
            dimension_semantics=("parallel", "parallel"),
            vmem_limit_bytes=vmem_limit),
    )(p_t, cam.astype(jnp.float32), im_flat,
      w0c, b0f, w1ac, w1bc, b1f, w2ac, w2bc, b2f)

    return out[:, :, :N]


# --------------------------- parameter init (deterministic) ---------------------------
def init_params(key, filter_channels):
    """Conv1d(kernel=1) weights as [out, in] matrices, biases as [out, 1]."""
    params = []
    c0 = filter_channels[0]
    for l in range(len(filter_channels) - 1):
        c_in = filter_channels[l] if l == 0 else filter_channels[l] + c0
        c_out = filter_channels[l + 1]
        key, kw, kb = jax.random.split(key, 3)
        scale = 1.0 / jnp.sqrt(jnp.float32(c_in))
        w = jax.random.uniform(kw, (c_out, c_in), jnp.float32, -scale, scale)
        b = jax.random.uniform(kb, (c_out, 1), jnp.float32, -scale, scale)
        params += [w, b]
    return params


# --------------------------- pure-JAX reference for validation ---------------------------
def _ref_grid_sample(im, grid):
    """im: (B,C,H,W), grid: (B,N,2) in [-1,1]; bilinear, align_corners=False, zeros pad."""
    B, C, H, W = im.shape
    x = grid[..., 0]
    y = grid[..., 1]
    ix = ((x + 1.0) * W - 1.0) * 0.5
    iy = ((y + 1.0) * H - 1.0) * 0.5
    x0 = jnp.floor(ix)
    y0 = jnp.floor(iy)
    x1 = x0 + 1.0
    y1 = y0 + 1.0
    wx1 = ix - x0
    wx0 = 1.0 - wx1
    wy1 = iy - y0
    wy0 = 1.0 - wy1

    def gather(yy, xx):
        inb = (xx >= 0) & (xx <= W - 1) & (yy >= 0) & (yy <= H - 1)
        xi = jnp.clip(xx, 0, W - 1).astype(jnp.int32)
        yi = jnp.clip(yy, 0, H - 1).astype(jnp.int32)
        vals = jax.vmap(lambda imb, yb, xb: imb[:, yb, xb])(im, yi, xi)  # (B, C, N)
        return vals * inb[:, None, :].astype(im.dtype)

    return (gather(y0, x0) * (wy0 * wx0)[:, None, :] +
            gather(y0, x1) * (wy0 * wx1)[:, None, :] +
            gather(y1, x0) * (wy1 * wx0)[:, None, :] +
            gather(y1, x1) * (wy1 * wx1)[:, None, :])


def reference_forward(p, cam, im_feat, params):
    s, tx, ty = cam[:, 0:1], cam[:, 1:2], cam[:, 2:3]
    tz = 2.0 * 5000.0 / (224.0 * s + 1e-9)
    denom = p[..., 2] + tz
    x2d = 5000.0 * (p[..., 0] + tx) / denom / (224.0 / 2.0)
    y2d = 5000.0 * (p[..., 1] + ty) / denom / (224.0 / 2.0)
    grid = jnp.stack([x2d, y2d], axis=-1)                     # (B, N, 2)
    pf = _ref_grid_sample(im_feat, grid)                      # (B, C, N)
    w0, b0, w1, b1, w2, b2 = params
    y = jax.nn.leaky_relu(jnp.einsum('oc,bcn->bon', w0, pf) + b0[None])
    y = jax.nn.leaky_relu(
        jnp.einsum('oc,bcn->bon', w1, jnp.concatenate([y, pf], 1)) + b1[None])
    y = jnp.einsum('oc,bcn->bon', w2, jnp.concatenate([y, pf], 1)) + b2[None]
    return jax.nn.relu(y)


if __name__ == "__main__":
    key = jax.random.PRNGKey(0)
    B, C, H, W, N = 2, 4, 16, 16, 8
    filter_channels = [C, 32, 16, 8]      # C_s=4 -> C_p=8 (three Conv1d layers)

    k1, k2, k3, k4, kp = jax.random.split(key, 5)
    p = 0.5 * jax.random.normal(k1, (B, N, 3), jnp.float32)        # mesh vertices
    cam_s = 1.0 + 0.1 * jax.random.normal(k2, (B, 1), jnp.float32)
    cam_t = 0.1 * jax.random.normal(k3, (B, 2), jnp.float32)
    cam = jnp.concatenate([cam_s, cam_t], axis=1)                  # [B, 3] = (s, tx, ty)
    im_feat = jax.random.normal(k4, (B, C, H, W), jnp.float32)

    params = init_params(kp, filter_channels)
    ref = reference_forward(p, cam, im_feat, params)

    # f32 MXU path: bit-accurate vs. the pure-JAX reference
    out_f32 = maf_extractor_forward(p, cam, im_feat, params, compute_dtype=jnp.float32)
    out_f32 = jax.block_until_ready(out_f32)
    assert out_f32.shape == (B, filter_channels[-1], N), out_f32.shape
    assert bool(jnp.allclose(out_f32, ref, rtol=1e-4, atol=1e-4)), "f32 mismatch vs reference"

    # bf16 MXU path (default, production-fast): loose tolerance for bf16 rounding
    out_bf16 = maf_extractor_forward(p, cam, im_feat, params, compute_dtype=jnp.bfloat16)
    out_bf16 = jax.block_until_ready(out_bf16)
    assert out_bf16.shape == (B, filter_channels[-1], N), out_bf16.shape
    assert bool(jnp.allclose(out_bf16, ref, rtol=3e-2, atol=3e-2)), "bf16 mismatch vs reference"

    # TODO(synk): Dmap/Umap sparse mesh down/up-sampling buffers and the non-IWP camera
    # path (j2d_processing) are not part of forward() with iwp_cam_mode=True and are not
    # reproduced.
    print("KERNEL_OK")
</pallas_src>

<mosaic_0001>
module attributes {stable_mosaic.version = 11 : i64} {
  func.func @maf_kernel(%arg0: i32, %arg1: i32, %arg2: memref<1x3x128xf32, #tpu.memory_space<vmem>>, %arg3: memref<2x3xf32, #tpu.memory_space<smem>>, %arg4: memref<1x4x256xf32, #tpu.memory_space<vmem>>, %arg5: memref<32x4xf32, #tpu.memory_space<vmem>>, %arg6: memref<32x1xf32, #tpu.memory_space<vmem>>, %arg7: memref<16x32xf32, #tpu.memory_space<vmem>>, %arg8: memref<16x4xf32, #tpu.memory_space<vmem>>, %arg9: memref<16x1xf32, #tpu.memory_space<vmem>>, %arg10: memref<8x16xf32, #tpu.memory_space<vmem>>, %arg11: memref<8x4xf32, #tpu.memory_space<vmem>>, %arg12: memref<8x1xf32, #tpu.memory_space<vmem>>, %arg13: memref<1x8x128xf32, #tpu.memory_space<vmem>>) attributes {dimension_semantics = [#tpu.dimension_semantics<parallel>, #tpu.dimension_semantics<parallel>], iteration_bounds = array<i64: 2, 1>, scalar_prefetch = 0 : i64, scratch_operands = 0 : i64, tpu.core_type = #tpu.core_type<tc>, window_params = [{transform_indices = @transform_0, window_bounds = array<i64: 1, 3, 128>}, {transform_indices = @transform_1, window_bounds = array<i64: 2, 3>}, {transform_indices = @transform_2, window_bounds = array<i64: 1, 4, 256>}, {pipeline_mode = #tpu.pipeline_mode<synchronous>, transform_indices = @transform_3, window_bounds = array<i64: 32, 4>}, {pipeline_mode = #tpu.pipeline_mode<synchronous>, transform_indices = @transform_4, window_bounds = array<i64: 32, 1>}, {pipeline_mode = #tpu.pipeline_mode<synchronous>, transform_indices = @transform_5, window_bounds = array<i64: 16, 32>}, {pipeline_mode = #tpu.pipeline_mode<synchronous>, transform_indices = @transform_6, window_bounds = array<i64: 16, 4>}, {pipeline_mode = #tpu.pipeline_mode<synchronous>, transform_indices = @transform_7, window_bounds = array<i64: 16, 1>}, {pipeline_mode = #tpu.pipeline_mode<synchronous>, transform_indices = @transform_8, window_bounds = array<i64: 8, 16>}, {pipeline_mode = #tpu.pipeline_mode<synchronous>, transform_indices = @transform_9, window_bounds = array<i64: 8, 4>}, {pipeline_mode = #tpu.pipeline_mode<synchronous>, transform_indices = @transform_10, window_bounds = array<i64: 8, 1>}, {transform_indices = @transform_11, window_bounds = array<i64: 1, 8, 128>}]} {
    %0 = arith.index_cast %arg0 : i32 to index
    %c0 = arith.constant 0 : index
    %1 = memref.load %arg3[%0, %c0] : memref<2x3xf32, #tpu.memory_space<smem>>
    %2 = arith.index_cast %arg0 : i32 to index
    %c1 = arith.constant 1 : index
    %3 = memref.load %arg3[%2, %c1] : memref<2x3xf32, #tpu.memory_space<smem>>
    %4 = arith.index_cast %arg0 : i32 to index
    %c2 = arith.constant 2 : index
    %5 = memref.load %arg3[%4, %c2] : memref<2x3xf32, #tpu.memory_space<smem>>
    %cst = arith.constant 2.240000e+02 : f32
    %6 = arith.mulf %cst, %1 : f32
    %cst_0 = arith.constant 9.99999971E-10 : f32
    %7 = arith.addf %6, %cst_0 : f32
    %c0_1 = arith.constant 0 : index
    %c0_2 = arith.constant 0 : index
    %c0_3 = arith.constant 0 : index
    %8 = vector.load %arg2[%c0_1, %c0_2, %c0_3] : memref<1x3x128xf32, #tpu.memory_space<vmem>>, vector<1x3x128xf32>
    %9 = vector.shape_cast %8 : vector<1x3x128xf32> to vector<3x128xf32>
    %10 = vector.extract_strided_slice %9 {offsets = [0, 0], sizes = [1, 128], strides = [1, 1]} : vector<3x128xf32> to vector<1x128xf32>
    %11 = vector.extract_strided_slice %9 {offsets = [1, 0], sizes = [1, 128], strides = [1, 1]} : vector<3x128xf32> to vector<1x128xf32>
    %12 = vector.extract_strided_slice %9 {offsets = [2, 0], sizes = [1, 128], strides = [1, 1]} : vector<3x128xf32> to vector<1x128xf32>
    %13 = vector.broadcast %7 : f32 to vector<1x128xf32>
    %14 = arith.mulf %12, %13 : vector<1x128xf32>
    %cst_4 = arith.constant 1.000000e+04 : f32
    %15 = vector.broadcast %cst_4 : f32 to vector<1x128xf32>
    %16 = arith.addf %14, %15 : vector<1x128xf32>
    %17 = vector.broadcast %7 : f32 to vector<1x128xf32>
    %18 = arith.divf %17, %16 : vector<1x128xf32>
    %19 = vector.broadcast %3 : f32 to vector<1x128xf32>
    %20 = arith.addf %10, %19 : vector<1x128xf32>
    %21 = arith.mulf %20, %18 : vector<1x128xf32>
    %cst_5 = arith.constant 44.6428566 : f32
    %22 = vector.broadcast %cst_5 : f32 to vector<1x128xf32>
    %23 = arith.mulf %21, %22 : vector<1x128xf32>
    %24 = vector.broadcast %5 : f32 to vector<1x128xf32>
    %25 = arith.addf %11, %24 : vector<1x128xf32>
    %26 = arith.mulf %25, %18 : vector<1x128xf32>
    %cst_6 = arith.constant 44.6428566 : f32
    %27 = vector.broadcast %cst_6 : f32 to vector<1x128xf32>
    %28 = arith.mulf %26, %27 : vector<1x128xf32>
    %cst_7 = arith.constant 1.000000e+00 : f32
    %29 = vector.broadcast %cst_7 : f32 to vector<1x128xf32>
    %30 = arith.addf %23, %29 : vector<1x128xf32>
    %cst_8 = arith.constant 1.600000e+01 : f32
    %31 = vector.broadcast %cst_8 : f32 to vector<1x128xf32>
    %32 = arith.mulf %30, %31 : vector<1x128xf32>
    %cst_9 = arith.constant 1.000000e+00 : f32
    %33 = vector.broadcast %cst_9 : f32 to vector<1x128xf32>
    %34 = arith.subf %32, %33 : vector<1x128xf32>
    %cst_10 = arith.constant 5.000000e-01 : f32
    %35 = vector.broadcast %cst_10 : f32 to vector<1x128xf32>
    %36 = arith.mulf %34, %35 : vector<1x128xf32>
    %cst_11 = arith.constant 1.000000e+00 : f32
    %37 = vector.broadcast %cst_11 : f32 to vector<1x128xf32>
    %38 = arith.addf %28, %37 : vector<1x128xf32>
    %cst_12 = arith.constant 1.600000e+01 : f32
    %39 = vector.broadcast %cst_12 : f32 to vector<1x128xf32>
    %40 = arith.mulf %38, %39 : vector<1x128xf32>
    %cst_13 = arith.constant 1.000000e+00 : f32
    %41 = vector.broadcast %cst_13 : f32 to vector<1x128xf32>
    %42 = arith.subf %40, %41 : vector<1x128xf32>
    %cst_14 = arith.constant 5.000000e-01 : f32
    %43 = vector.broadcast %cst_14 : f32 to vector<1x128xf32>
    %44 = arith.mulf %42, %43 : vector<1x128xf32>
    %45 = math.floor %36 : vector<1x128xf32>
    %cst_15 = arith.constant 1.000000e+00 : f32
    %46 = vector.broadcast %cst_15 : f32 to vector<1x128xf32>
    %47 = arith.addf %45, %46 : vector<1x128xf32>
    %48 = math.floor %44 : vector<1x128xf32>
    %cst_16 = arith.constant 1.000000e+00 : f32
    %49 = vector.broadcast %cst_16 : f32 to vector<1x128xf32>
    %50 = arith.addf %48, %49 : vector<1x128xf32>
    %51 = arith.subf %36, %45 : vector<1x128xf32>
    %cst_17 = arith.constant 1.000000e+00 : f32
    %52 = vector.broadcast %cst_17 : f32 to vector<1x128xf32>
    %53 = arith.subf %52, %51 : vector<1x128xf32>
    %54 = arith.subf %44, %48 : vector<1x128xf32>
    %cst_18 = arith.constant 1.000000e+00 : f32
    %55 = vector.broadcast %cst_18 : f32 to vector<1x128xf32>
    %56 = arith.subf %55, %54 : vector<1x128xf32>
    %57 = tpu.iota {dimensions = array<i32: 0>} : vector<256x128xi32>
    %58 = arith.mulf %56, %53 : vector<1x128xf32>
    %cst_19 = arith.constant 0.000000e+00 : f32
    %59 = vector.broadcast %cst_19 : f32 to vector<1x128xf32>
    %60 = arith.cmpf oge, %45, %59 : vector<1x128xf32>
    %cst_20 = arith.constant 1.500000e+01 : f32
    %61 = vector.broadcast %cst_20 : f32 to vector<1x128xf32>
    %62 = arith.cmpf ole, %45, %61 : vector<1x128xf32>
    %63 = arith.andi %60, %62 : vector<1x128xi1>
    %cst_21 = arith.constant 0.000000e+00 : f32
    %64 = vector.broadcast %cst_21 : f32 to vector<1x128xf32>
    %65 = arith.cmpf oge, %48, %64 : vector<1x128xf32>
    %66 = arith.andi %63, %65 : vector<1x128xi1>
    %cst_22 = arith.constant 1.500000e+01 : f32
    %67 = vector.broadcast %cst_22 : f32 to vector<1x128xf32>
    %68 = arith.cmpf ole, %48, %67 : vector<1x128xf32>
    %69 = arith.andi %66, %68 : vector<1x128xi1>
    %cst_23 = arith.constant 0.000000e+00 : f32
    %cst_24 = arith.constant 1.500000e+01 : f32
    %70 = vector.broadcast %cst_23 : f32 to vector<1x128xf32>
    %71 = arith.maximumf %70, %45 : vector<1x128xf32>
    %72 = vector.broadcast %cst_24 : f32 to vector<1x128xf32>
    %73 = arith.minimumf %72, %71 : vector<1x128xf32>
    %74 = arith.fptosi %73 : vector<1x128xf32> to vector<1x128xi32>
    %cst_25 = arith.constant 0.000000e+00 : f32
    %cst_26 = arith.constant 1.500000e+01 : f32
    %75 = vector.broadcast %cst_25 : f32 to vector<1x128xf32>
    %76 = arith.maximumf %75, %48 : vector<1x128xf32>
    %77 = vector.broadcast %cst_26 : f32 to vector<1x128xf32>
    %78 = arith.minimumf %77, %76 : vector<1x128xf32>
    %79 = arith.fptosi %78 : vector<1x128xf32> to vector<1x128xi32>
    %c16_i32 = arith.constant 16 : i32
    %80 = vector.broadcast %c16_i32 : i32 to vector<1x128xi32>
    %81 = arith.muli %79, %80 : vector<1x128xi32>
    %82 = arith.addi %81, %74 : vector<1x128xi32>
    %83 = vector.broadcast %82 : vector<1x128xi32> to vector<256x128xi32>
    %84 = arith.cmpi eq, %57, %83 : vector<256x128xi32>
    %85 = vector.broadcast %69 : vector<1x128xi1> to vector<256x128xi1>
    %86 = arith.andi %84, %85 : vector<256x128xi1>
    %cst_27 = arith.constant 0.000000e+00 : f32
    %87 = vector.shape_cast %58 : vector<1x128xf32> to vector<1x128xf32>
    %88 = vector.broadcast %87 : vector<1x128xf32> to vector<256x128xf32>
    %89 = vector.broadcast %cst_27 : f32 to vector<256x128xf32>
    %90 = arith.select %86, %88, %89 : vector<256x128xi1>, vector<256x128xf32>
    %91 = arith.mulf %56, %51 : vector<1x128xf32>
    %cst_28 = arith.constant 0.000000e+00 : f32
    %92 = vector.broadcast %cst_28 : f32 to vector<1x128xf32>
    %93 = arith.cmpf oge, %47, %92 : vector<1x128xf32>
    %cst_29 = arith.constant 1.500000e+01 : f32
    %94 = vector.broadcast %cst_29 : f32 to vector<1x128xf32>
    %95 = arith.cmpf ole, %47, %94 : vector<1x128xf32>
    %96 = arith.andi %93, %95 : vector<1x128xi1>
    %cst_30 = arith.constant 0.000000e+00 : f32
    %97 = vector.broadcast %cst_30 : f32 to vector<1x128xf32>
    %98 = arith.cmpf oge, %48, %97 : vector<1x128xf32>
    %99 = arith.andi %96, %98 : vector<1x128xi1>
    %cst_31 = arith.constant 1.500000e+01 : f32
    %100 = vector.broadcast %cst_31 : f32 to vector<1x128xf32>
    %101 = arith.cmpf ole, %48, %100 : vector<1x128xf32>
    %102 = arith.andi %99, %101 : vector<1x128xi1>
    %cst_32 = arith.constant 0.000000e+00 : f32
    %cst_33 = arith.constant 1.500000e+01 : f32
    %103 = vector.broadcast %cst_32 : f32 to vector<1x128xf32>
    %104 = arith.maximumf %103, %47 : vector<1x128xf32>
    %105 = vector.broadcast %cst_33 : f32 to vector<1x128xf32>
    %106 = arith.minimumf %105, %104 : vector<1x128xf32>
    %107 = arith.fptosi %106 : vector<1x128xf32> to vector<1x128xi32>
    %cst_34 = arith.constant 0.000000e+00 : f32
    %cst_35 = arith.constant 1.500000e+01 : f32
    %108 = vector.broadcast %cst_34 : f32 to vector<1x128xf32>
    %109 = arith.maximumf %108, %48 : vector<1x128xf32>
    %110 = vector.broadcast %cst_35 : f32 to vector<1x128xf32>
    %111 = arith.minimumf %110, %109 : vector<1x128xf32>
    %112 = arith.fptosi %111 : vector<1x128xf32> to vector<1x128xi32>
    %c16_i32_36 = arith.constant 16 : i32
    %113 = vector.broadcast %c16_i32_36 : i32 to vector<1x128xi32>
    %114 = arith.muli %112, %113 : vector<1x128xi32>
    %115 = arith.addi %114, %107 : vector<1x128xi32>
    %116 = vector.broadcast %115 : vector<1x128xi32> to vector<256x128xi32>
    %117 = arith.cmpi eq, %57, %116 : vector<256x128xi32>
    %118 = vector.broadcast %102 : vector<1x128xi1> to vector<256x128xi1>
    %119 = arith.andi %117, %118 : vector<256x128xi1>
    %cst_37 = arith.constant 0.000000e+00 : f32
    %120 = vector.shape_cast %91 : vector<1x128xf32> to vector<1x128xf32>
    %121 = vector.broadcast %120 : vector<1x128xf32> to vector<256x128xf32>
    %122 = vector.broadcast %cst_37 : f32 to vector<256x128xf32>
    %123 = arith.select %119, %121, %122 : vector<256x128xi1>, vector<256x128xf32>
    %124 = arith.addf %90, %123 : vector<256x128xf32>
    %125 = arith.mulf %54, %53 : vector<1x128xf32>
    %cst_38 = arith.constant 0.000000e+00 : f32
    %126 = vector.broadcast %cst_38 : f32 to vector<1x128xf32>
    %127 = arith.cmpf oge, %45, %126 : vector<1x128xf32>
    %cst_39 = arith.constant 1.500000e+01 : f32
    %128 = vector.broadcast %cst_39 : f32 to vector<1x128xf32>
    %129 = arith.cmpf ole, %45, %128 : vector<1x128xf32>
    %130 = arith.andi %127, %129 : vector<1x128xi1>
    %cst_40 = arith.constant 0.000000e+00 : f32
    %131 = vector.broadcast %cst_40 : f32 to vector<1x128xf32>
    %132 = arith.cmpf oge, %50, %131 : vector<1x128xf32>
    %133 = arith.andi %130, %132 : vector<1x128xi1>
    %cst_41 = arith.constant 1.500000e+01 : f32
    %134 = vector.broadcast %cst_41 : f32 to vector<1x128xf32>
    %135 = arith.cmpf ole, %50, %134 : vector<1x128xf32>
    %136 = arith.andi %133, %135 : vector<1x128xi1>
    %cst_42 = arith.constant 0.000000e+00 : f32
    %cst_43 = arith.constant 1.500000e+01 : f32
    %137 = vector.broadcast %cst_42 : f32 to vector<1x128xf32>
    %138 = arith.maximumf %137, %45 : vector<1x128xf32>
    %139 = vector.broadcast %cst_43 : f32 to vector<1x128xf32>
    %140 = arith.minimumf %139, %138 : vector<1x128xf32>
    %141 = arith.fptosi %140 : vector<1x128xf32> to vector<1x128xi32>
    %cst_44 = arith.constant 0.000000e+00 : f32
    %cst_45 = arith.constant 1.500000e+01 : f32
    %142 = vector.broadcast %cst_44 : f32 to vector<1x128xf32>
    %143 = arith.maximumf %142, %50 : vector<1x128xf32>
    %144 = vector.broadcast %cst_45 : f32 to vector<1x128xf32>
    %145 = arith.minimumf %144, %143 : vector<1x128xf32>
    %146 = arith.fptosi %145 : vector<1x128xf32> to vector<1x128xi32>
    %c16_i32_46 = arith.constant 16 : i32
    %147 = vector.broadcast %c16_i32_46 : i32 to vector<1x128xi32>
    %148 = arith.muli %146, %147 : vector<1x128xi32>
    %149 = arith.addi %148, %141 : vector<1x128xi32>
    %150 = vector.broadcast %149 : vector<1x128xi32> to vector<256x128xi32>
    %151 = arith.cmpi eq, %57, %150 : vector<256x128xi32>
    %152 = vector.broadcast %136 : vector<1x128xi1> to vector<256x128xi1>
    %153 = arith.andi %151, %152 : vector<256x128xi1>
    %cst_47 = arith.constant 0.000000e+00 : f32
    %154 = vector.shape_cast %125 : vector<1x128xf32> to vector<1x128xf32>
    %155 = vector.broadcast %154 : vector<1x128xf32> to vector<256x128xf32>
    %156 = vector.broadcast %cst_47 : f32 to vector<256x128xf32>
    %157 = arith.select %153, %155, %156 : vector<256x128xi1>, vector<256x128xf32>
    %158 = arith.addf %124, %157 : vector<256x128xf32>
    %159 = arith.mulf %54, %51 : vector<1x128xf32>
    %cst_48 = arith.constant 0.000000e+00 : f32
    %160 = vector.broadcast %cst_48 : f32 to vector<1x128xf32>
    %161 = arith.cmpf oge, %47, %160 : vector<1x128xf32>
    %cst_49 = arith.constant 1.500000e+01 : f32
    %162 = vector.broadcast %cst_49 : f32 to vector<1x128xf32>
    %163 = arith.cmpf ole, %47, %162 : vector<1x128xf32>
    %164 = arith.andi %161, %163 : vector<1x128xi1>
    %cst_50 = arith.constant 0.000000e+00 : f32
    %165 = vector.broadcast %cst_50 : f32 to vector<1x128xf32>
    %166 = arith.cmpf oge, %50, %165 : vector<1x128xf32>
    %167 = arith.andi %164, %166 : vector<1x128xi1>
    %cst_51 = arith.constant 1.500000e+01 : f32
    %168 = vector.broadcast %cst_51 : f32 to vector<1x128xf32>
    %169 = arith.cmpf ole, %50, %168 : vector<1x128xf32>
    %170 = arith.andi %167, %169 : vector<1x128xi1>
    %cst_52 = arith.constant 0.000000e+00 : f32
    %cst_53 = arith.constant 1.500000e+01 : f32
    %171 = vector.broadcast %cst_52 : f32 to vector<1x128xf32>
    %172 = arith.maximumf %171, %47 : vector<1x128xf32>
    %173 = vector.broadcast %cst_53 : f32 to vector<1x128xf32>
    %174 = arith.minimumf %173, %172 : vector<1x128xf32>
    %175 = arith.fptosi %174 : vector<1x128xf32> to vector<1x128xi32>
    %cst_54 = arith.constant 0.000000e+00 : f32
    %cst_55 = arith.constant 1.500000e+01 : f32
    %176 = vector.broadcast %cst_54 : f32 to vector<1x128xf32>
    %177 = arith.maximumf %176, %50 : vector<1x128xf32>
    %178 = vector.broadcast %cst_55 : f32 to vector<1x128xf32>
    %179 = arith.minimumf %178, %177 : vector<1x128xf32>
    %180 = arith.fptosi %179 : vector<1x128xf32> to vector<1x128xi32>
    %c16_i32_56 = arith.constant 16 : i32
    %181 = vector.broadcast %c16_i32_56 : i32 to vector<1x128xi32>
    %182 = arith.muli %180, %181 : vector<1x128xi32>
    %183 = arith.addi %182, %175 : vector<1x128xi32>
    %184 = vector.broadcast %183 : vector<1x128xi32> to vector<256x128xi32>
    %185 = arith.cmpi eq, %57, %184 : vector<256x128xi32>
    %186 = vector.broadcast %170 : vector<1x128xi1> to vector<256x128xi1>
    %187 = arith.andi %185, %186 : vector<256x128xi1>
    %cst_57 = arith.constant 0.000000e+00 : f32
    %188 = vector.shape_cast %159 : vector<1x128xf32> to vector<1x128xf32>
    %189 = vector.broadcast %188 : vector<1x128xf32> to vector<256x128xf32>
    %190 = vector.broadcast %cst_57 : f32 to vector<256x128xf32>
    %191 = arith.select %187, %189, %190 : vector<256x128xi1>, vector<256x128xf32>
    %192 = arith.addf %158, %191 : vector<256x128xf32>
    %c0_58 = arith.constant 0 : index
    %c0_59 = arith.constant 0 : index
    %c0_60 = arith.constant 0 : index
    %193 = vector.load %arg4[%c0_58, %c0_59, %c0_60] : memref<1x4x256xf32, #tpu.memory_space<vmem>>, vector<1x4x256xf32>
    %194 = vector.shape_cast %193 : vector<1x4x256xf32> to vector<4x256xf32>
    %cst_61 = arith.constant dense<0.000000e+00> : vector<4x128xf32>
    %195 = tpu.matmul %194, %192, %cst_61 {dimension_numbers = #tpu.dot_dimension_numbers<[1], [0], [0], [1], [0, 0, 1, 1], [], []>} : vector<4x256xf32>, vector<256x128xf32>, vector<4x128xf32> -> vector<4x128xf32>
    %c0_62 = arith.constant 0 : index
    %c0_63 = arith.constant 0 : index
    %196 = vector.load %arg5[%c0_62, %c0_63] : memref<32x4xf32, #tpu.memory_space<vmem>>, vector<32x4xf32>
    %cst_64 = arith.constant dense<0.000000e+00> : vector<32x128xf32>
    %197 = tpu.matmul %196, %195, %cst_64 {dimension_numbers = #tpu.dot_dimension_numbers<[1], [0], [0], [1], [0, 0, 1, 1], [], []>} : vector<32x4xf32>, vector<4x128xf32>, vector<32x128xf32> -> vector<32x128xf32>
    %c0_65 = arith.constant 0 : index
    %c0_66 = arith.constant 0 : index
    %198 = vector.load %arg6[%c0_65, %c0_66] : memref<32x1xf32, #tpu.memory_space<vmem>>, vector<32x1xf32>
    %199 = vector.broadcast %198 : vector<32x1xf32> to vector<32x128xf32>
    %200 = arith.addf %197, %199 : vector<32x128xf32>
    %cst_67 = arith.constant 0.000000e+00 : f32
    %201 = vector.broadcast %cst_67 : f32 to vector<32x128xf32>
    %202 = arith.cmpf oge, %200, %201 : vector<32x128xf32>
    %cst_68 = arith.constant 0.00999999977 : f32
    %203 = vector.broadcast %cst_68 : f32 to vector<32x128xf32>
    %204 = arith.mulf %203, %200 : vector<32x128xf32>
    %205 = arith.select %202, %200, %204 : vector<32x128xi1>, vector<32x128xf32>
    %c0_69 = arith.constant 0 : index
    %c0_70 = arith.constant 0 : index
    %206 = vector.load %arg7[%c0_69, %c0_70] : memref<16x32xf32, #tpu.memory_space<vmem>>, vector<16x32xf32>
    %cst_71 = arith.constant dense<0.000000e+00> : vector<16x128xf32>
    %207 = tpu.matmul %206, %205, %cst_71 {dimension_numbers = #tpu.dot_dimension_numbers<[1], [0], [0], [1], [0, 0, 1, 1], [], []>} : vector<16x32xf32>, vector<32x128xf32>, vector<16x128xf32> -> vector<16x128xf32>
    %c0_72 = arith.constant 0 : index
    %c0_73 = arith.constant 0 : index
    %208 = vector.load %arg8[%c0_72, %c0_73] : memref<16x4xf32, #tpu.memory_space<vmem>>, vector<16x4xf32>
    %cst_74 = arith.constant dense<0.000000e+00> : vector<16x128xf32>
    %209 = tpu.matmul %208, %195, %cst_74 {dimension_numbers = #tpu.dot_dimension_numbers<[1], [0], [0], [1], [0, 0, 1, 1], [], []>} : vector<16x4xf32>, vector<4x128xf32>, vector<16x128xf32> -> vector<16x128xf32>
    %210 = arith.addf %207, %209 : vector<16x128xf32>
    %c0_75 = arith.constant 0 : index
    %c0_76 = arith.constant 0 : index
    %211 = vector.load %arg9[%c0_75, %c0_76] : memref<16x1xf32, #tpu.memory_space<vmem>>, vector<16x1xf32>
    %212 = vector.broadcast %211 : vector<16x1xf32> to vector<16x128xf32>
    %213 = arith.addf %210, %212 : vector<16x128xf32>
    %cst_77 = arith.constant 0.000000e+00 : f32
    %214 = vector.broadcast %cst_77 : f32 to vector<16x128xf32>
    %215 = arith.cmpf oge, %213, %214 : vector<16x128xf32>
    %cst_78 = arith.constant 0.00999999977 : f32
    %216 = vector.broadcast %cst_78 : f32 to vector<16x128xf32>
    %217 = arith.mulf %216, %213 : vector<16x128xf32>
    %218 = arith.select %215, %213, %217 : vector<16x128xi1>, vector<16x128xf32>
    %c0_79 = arith.constant 0 : index
    %c0_80 = arith.constant 0 : index
    %219 = vector.load %arg10[%c0_79, %c0_80] : memref<8x16xf32, #tpu.memory_space<vmem>>, vector<8x16xf32>
    %cst_81 = arith.constant dense<0.000000e+00> : vector<8x128xf32>
    %220 = tpu.matmul %219, %218, %cst_81 {dimension_numbers = #tpu.dot_dimension_numbers<[1], [0], [0], [1], [0, 0, 1, 1], [], []>} : vector<8x16xf32>, vector<16x128xf32>, vector<8x128xf32> -> vector<8x128xf32>
    %c0_82 = arith.constant 0 : index
    %c0_83 = arith.constant 0 : index
    %221 = vector.load %arg11[%c0_82, %c0_83] : memref<8x4xf32, #tpu.memory_space<vmem>>, vector<8x4xf32>
    %cst_84 = arith.constant dense<0.000000e+00> : vector<8x128xf32>
    %222 = tpu.matmul %221, %195, %cst_84 {dimension_numbers = #tpu.dot_dimension_numbers<[1], [0], [0], [1], [0, 0, 1, 1], [], []>} : vector<8x4xf32>, vector<4x128xf32>, vector<8x128xf32> -> vector<8x128xf32>
    %223 = arith.addf %220, %222 : vector<8x128xf32>
    %c0_85 = arith.constant 0 : index
    %c0_86 = arith.constant 0 : index
    %224 = vector.load %arg12[%c0_85, %c0_86] : memref<8x1xf32, #tpu.memory_space<vmem>>, vector<8x1xf32>
    %225 = vector.broadcast %224 : vector<8x1xf32> to vector<8x128xf32>
    %226 = arith.addf %223, %225 : vector<8x128xf32>
    %cst_87 = arith.constant 0.000000e+00 : f32
    %227 = vector.broadcast %cst_87 : f32 to vector<8x128xf32>
    %228 = arith.maximumf %226, %227 : vector<8x128xf32>
    %c0_88 = arith.constant 0 : index
    %c0_89 = arith.constant 0 : index
    %c0_90 = arith.constant 0 : index
    %229 = vector.load %arg13[%c0_88, %c0_89, %c0_90] : memref<1x8x128xf32, #tpu.memory_space<vmem>>, vector<1x8x128xf32>
    %230 = vector.shape_cast %229 : vector<1x8x128xf32> to vector<8x128xf32>
    %231 = vector.shape_cast %228 : vector<8x128xf32> to vector<1x8x128xf32>
    tpu.vector_store %arg13[%c0_88, %c0_89, %c0_90], %231 {strides = array<i32>} : memref<1x8x128xf32, #tpu.memory_space<vmem>>, vector<1x8x128xf32>,
    return
  }
  func.func @transform_0(%arg0: i32, %arg1: i32) -> (i32, i32, i32) {
    %c0_i32 = arith.constant 0 : i32
    %c0_i32_0 = arith.constant 0 : i32
    return %arg0, %c0_i32, %arg1 : i32, i32, i32
  }
  func.func @transform_1(%arg0: i32, %arg1: i32) -> (i32, i32) {
    %c0_i32 = arith.constant 0 : i32
    %c0_i32_0 = arith.constant 0 : i32
    %c0_i32_1 = arith.constant 0 : i32
    return %c0_i32, %c0_i32_0 : i32, i32
  }
  func.func @transform_2(%arg0: i32, %arg1: i32) -> (i32, i32, i32) {
    %c0_i32 = arith.constant 0 : i32
    %c0_i32_0 = arith.constant 0 : i32
    %c0_i32_1 = arith.constant 0 : i32
    return %arg0, %c0_i32, %c0_i32_0 : i32, i32, i32
  }
  func.func @transform_3(%arg0: i32, %arg1: i32) -> (i32, i32) {
    %c0_i32 = arith.constant 0 : i32
    %c0_i32_0 = arith.constant 0 : i32
    %c0_i32_1 = arith.constant 0 : i32
    return %c0_i32, %c0_i32_0 : i32, i32
  }
  func.func @transform_4(%arg0: i32, %arg1: i32) -> (i32, i32) {
    %c0_i32 = arith.constant 0 : i32
    %c0_i32_0 = arith.constant 0 : i32
    %c0_i32_1 = arith.constant 0 : i32
    return %c0_i32, %c0_i32_0 : i32, i32
  }
  func.func @transform_5(%arg0: i32, %arg1: i32) -> (i32, i32) {
    %c0_i32 = arith.constant 0 : i32
    %c0_i32_0 = arith.constant 0 : i32
    %c0_i32_1 = arith.constant 0 : i32
    return %c0_i32, %c0_i32_0 : i32, i32
  }
  func.func @transform_6(%arg0: i32, %arg1: i32) -> (i32, i32) {
    %c0_i32 = arith.constant 0 : i32
    %c0_i32_0 = arith.constant 0 : i32
    %c0_i32_1 = arith.constant 0 : i32
    return %c0_i32, %c0_i32_0 : i32, i32
  }
  func.func @transform_7(%arg0: i32, %arg1: i32) -> (i32, i32) {
    %c0_i32 = arith.constant 0 : i32
    %c0_i32_0 = arith.constant 0 : i32
    %c0_i32_1 = arith.constant 0 : i32
    return %c0_i32, %c0_i32_0 : i32, i32
  }
  func.func @transform_8(%arg0: i32, %arg1: i32) -> (i32, i32) {
    %c0_i32 = arith.constant 0 : i32
    %c0_i32_0 = arith.constant 0 : i32
    %c0_i32_1 = arith.constant 0 : i32
    return %c0_i32, %c0_i32_0 : i32, i32
  }
  func.func @transform_9(%arg0: i32, %arg1: i32) -> (i32, i32) {
    %c0_i32 = arith.constant 0 : i32
    %c0_i32_0 = arith.constant 0 : i32
    %c0_i32_1 = arith.constant 0 : i32
    return %c0_i32, %c0_i32_0 : i32, i32
  }
  func.func @transform_10(%arg0: i32, %arg1: i32) -> (i32, i32) {
    %c0_i32 = arith.constant 0 : i32
    %c0_i32_0 = arith.constant 0 : i32
    %c0_i32_1 = arith.constant 0 : i32
    return %c0_i32, %c0_i32_0 : i32, i32
  }
  func.func @transform_11(%arg0: i32, %arg1: i32) -> (i32, i32, i32) {
    %c0_i32 = arith.constant 0 : i32
    %c0_i32_0 = arith.constant 0 : i32
    return %arg0, %c0_i32, %arg1 : i32, i32, i32
  }
}

</mosaic_0001>

<bundles_post_ra>
// kernel: tpu_custom_call.1
= control target key start
LH: loop header
LB: loop body
LE: loop exit
PB: predicated region body
PF: predicated region fallthrough
CT: control target
= control target key end

     0   :  { %s3307_s0 = inlined_call_operand.vmem [shape: f32[2,3,128], index: 0, kind: input, shape index: {}]   ;;  %s3308_s1 = inlined_call_operand.vmem [shape: f32[2,3], index: 1, kind: input, shape index: {}]   ;;  %s3309_s2 = inlined_call_operand.vmem [shape: f32[2,4,256], index: 2, kind: input, shape index: {}]   ;;  %s3310_s3 = inlined_call_operand.vmem [shape: f32[32,4], index: 3, kind: input, shape index: {}]   ;;  %s3311_s4 = inlined_call_operand.vmem [shape: f32[32,1], index: 4, kind: input, shape index: {}]   ;;  %s3312_s5 = inlined_call_operand.vmem [shape: f32[16,32], index: 5, kind: input, shape index: {}]   ;;  %s3313_s6 = inlined_call_operand.vmem [shape: f32[16,4], index: 6, kind: input, shape index: {}]   ;;  %s3314_s7 = inlined_call_operand.vmem [shape: f32[16,1], index: 7, kind: input, shape index: {}]   ;;  %s3315_s8 = inlined_call_operand.vmem [shape: f32[8,16], index: 8, kind: input, shape index: {}]   ;;  %s3316_s9 = inlined_call_operand.vmem [shape: f32[8,4], index: 9, kind: input, shape index: {}]   ;;  %s3317_s10 = inlined_call_operand.vmem [shape: f32[8,1], index: 10, kind: input, shape index: {}]   ;;  %s3318_s11 = inlined_call_operand.hbm [shape: f32[2,8,128], index: 11, kind: output, shape index: {}]  }
   0x1   :  { %3321 = sst [smem:[#allocation10_spill]] %s3308_s1 }
   0x2   :  { %16 = vsyncpa [#allocation4], 0 }
   0x3   :  { %17 = vsyncpa [#allocation3], 0 }
   0x4   :  { %19 = vsyncpa [#allocation3 + $0x1], 0  ;;  %s2199_s17 = smov 0   ;;  %s2201_s18 = smov 0  }
   0x5   :  { %s2203_s19 = smov 0   ;;  %s2205_s20 = smov 0  }
   0x6   :  { %s2207_s21 = smov 0   ;;  %s2209_s22 = smov 0  }
   0x7 LB: > { %3322 = sst [smem:[#allocation8_spill]] %s2127_s21  ;;  %s1784_s23 = sadd.s32 4294967295, %s2131_s22   ;;  %s2131_s22 = sphi %s2209_s22, %s25_s22   ;;  %s2127_s21 = sphi %s2207_s21, %s3414_s21   ;;  %s2123_s20 = sphi %s2205_s20, %s3413_s20   ;;  %s2119_s19 = sphi %s2203_s19, %s3417_s19   ;;  %s2115_s18 = sphi %s2201_s18, %s3416_s18   ;;  %s2111_s17 = sphi %s2199_s17, %s3415_s17  }
   0x8   : > { %s1785_s24 = sadd.s32 4294967294, %s2131_s22   ;;  %s37_s25 = sadd.s32 1, %s2127_s21 }
   0x9   : > { %s289_s26 = sadd.s32 1, %s2119_s19  ;;  %p39_p0 = scmp.ge.s32.totalorder %s37_s25, 2 }
   0xa   : > { %p299_p1 = scmp.ne.s32.totalorder %s2119_s19, %s2115_s18  ;;  %p300_p2 = scmp.eq.s32.totalorder %s1784_s23, 1 }
   0xb   : > { %p305_p3 = scmp.ne.s32.totalorder %s2115_s18, %s2111_s17  ;;  %s3419_s25 = smov (%p39_p0, %s37_s25), 0 }
   0xc   : > { %3323 = sst [smem:[#allocation9_spill]] %s3419_s25  ;;  %p2239_p4 = por %p300_p2, %p299_p1 }
   0xd   : > { %p306_p5 = scmp.eq.s32.totalorder %s1785_s24, 1  ;;  %s284_s28 = ssub.s32 %s2127_s21, %s3419_s25 }
   0xe   : > { %p1786_p6 = scmp.ge.s32.totalorder %s2131_s22, 1  ;;  %p287_p7 = scmp.eq.s32.totalorder %s284_s28, 0 }
   0xf   : > { %p2246_p8 = por %p306_p5, %p305_p3  ;;  %p313_p9 = scmp.lt.s32.totalorder %s2131_s22, 3 }
  0x10   : > { %s2252_s30 = scalar_select %p287_p7, %s2119_s19, %s289_s26  }
  0x11   : > { %p2254_p10 = pnand %p1786_p6, %p313_p9  ;;  %p2258_p11 = scmp.eq.s32.totalorder %s1784_s23, 0 }
  0x12   : > { %s3328_s1 = sld [smem:[#allocation10_spill]] }
  0x13   : > { %p1965_p12 = pneg %p2254_p10 }
  0x15   : > { %p1966_p13 = pnand %p2258_p11, %p1965_p12 }
  0x17   : > { %p2036_p1 = pneg %p1966_p13 }
  0x18   : > { %s326_s16 = sshll.u32 %s3328_s1, 4  ;;  %s327_s16 = int_to_ptr.vmem [resolvable:$true] %s326_s16 }
  0x19   : > { %s2034_s24 = scalar_lea.vmem %s327_s16, 32  ;;  %p2042_p5 = scmp.lt.s32.totalorder %s327_s16, %s327_s16 }
  0x1a   : > { %p2035_p0 = scmp.ne.s32.totalorder %s327_s16, %s2034_s24  ;;  %p2043_p6 = scmp.lt.s32.totalorder %s2034_s24, %s2034_s24 }
  0x1c   : > { %p2037_p2 = pnand %p2036_p1, %p2035_p0  ;;  %p2044_p7 = por %p2043_p6, %p2042_p5 }
  0x1e   : > { %p2038_p3 = pneg %p2037_p2 }
  0x20   : > { %p2045_p9 = pnand %p2044_p7, %p2038_p3 }
  0x22   : > { %2048 = shalt.err (!%p2045_p9)
}
  0x23   : > { %s2133_s23 = smov [#allocation2]   ;;  %381 = sbr.rel (%p2254_p10) target bundleno = 1143 (0x477), region = 64 }
  0x24   : > { %1968 = dma.vmem_to_smem (!%p1966_p13), %s327_s16, 32, %s2133_s23, [#allocation4]  }
  0x2a   : > { %2102 = dma.done.wait (%p2258_p11), [#allocation4], 32  }
  0x2b   : > { %2104 = vsyncadd (%p2258_p11), [#allocation4], 4294967264 }
  0x2c   : > { %387 = sfence }
  0x2d   : > { %p429_p12 = scmp.lt.s32.totalorder %s2123_s20, 1  ;;  %s2277_s26 = sshll.u32 %s2123_s20, 7  ;;  %v2134_v0 = vmov 0   ;;  %v484_v25 = vlaneseq }
  0x2e   : > { %s442_s28 = sld [smem:[#allocation2 + %s2277_s26]]  ;;  %2029 = vset.pattern.permute.xlu0 %v2134_v0  ;;  %2030 = vset.pattern.permute.xlu1 %v2134_v0  ;;  %s443_s23 = sadd.s32 1, %s2277_s26 }
  0x2f   : > { %s3421_s20 = smov (!%p429_p12, %s2123_s20), 1  ;;  %s445_s1 = sadd.s32 2, %s2277_s26  ;;  %v2293_v30 = vshrl.u32 %v484_v25, 7 }
  0x30   : > { %s1792_s12 = sshll.u32 %s3421_s20, 2  ;;  %s444_s25 = sld [smem:[#allocation2 + %s443_s23]] }
  0x31   : > { %s435_s15 = scalar_lea.vmem %s3307_s0, %s1792_s12  ;;  %s446_s21 = sld [smem:[#allocation2 + %s445_s1]]  ;;  %v2322_v48 = vsub.s32 0, %v2293_v30  ;;  %v2327_v52 = vadd.s32 128, %v2293_v30  ;;  %v2330_v53 = vsub.s32 1, %v2293_v30 }
  0x32   : > { %v449_v1 = vld [vmem:[%s435_s15] sm:$0x7]  ;;  %s1815_s1 = sshll.u32 %s3421_s20, 3  ;;  %s3260_s15 = scalar_lea.hbm %s3318_s11, %s2277_s26 }
  0x33   : > { %s2138_s23 = smov [#allocation5]  }
  0x34   : > { %s447_s16 = smul.f32 224.0, %s442_s28 }
  0x36   : > { %s448_s24 = sadd.f32 1e-09, %s447_s16  ;;  %v455_v5 = vstv %s444_s25  ;;  %s440_s25 = scalar_lea.vmem %s3309_s2, %s1815_s1 }
  0x37   : > { %v462_v6 = vstv %s446_s21  ;;  %v456_v9 = vadd.f32 %v455_v5, %v449_v1  ;;  %s426_s21 = sand.u32 1, %s2115_s18   ;;  %s2053_s1 = sshll.u32 %s2138_s23, 4  ;;  %s2054_s1 = int_to_ptr.vmem [resolvable:$false] %s2053_s1 }
  0x38   : > { %v450_v2 = vstv %s448_s24  ;;  %v463_v10 = vadd.f32 %v462_v6, %v449_v1  ;;  %s1675_s16 = scalar_lea.sflag [#allocation3], %s426_s21  ;;  %s2055_s20 = scalar_lea.vmem %s2054_s1, 256 }
  0x39   : > { %v451_v3 = vmul.f32 %v450_v2, %v449_v1 }
  0x3b   : > { %v452_v4 = vadd.f32 10000.0, %v451_v3 }
  0x3d   : > { %2032 = vrcp.f32 %v452_v4 }
  0x47   : > { %v2033_v7 = vpop.eup %2032 }
  0x48   : > { %v454_v8 = vmul.f32 %v2033_v7, %v450_v2 }
  0x4a   : > { %v458_v11 = vrot.slane %v454_v8, 2  ;;  %v464_v12 = vrot.slane %v454_v8, 1 }
  0x4c   : > { %v460_v13 = vmul.f32 %v458_v11, %v456_v9  ;;  %v466_v14 = vmul.f32 %v464_v12, %v463_v10  ;;  %v2349_v9 = vadd.s32 136, %v2293_v30 }
  0x4e   : > { %v461_v15 = vmul.f32 44.642857, %v460_v13  ;;  %v467_v16 = vmul.f32 44.642857, %v466_v14 }
  0x50   : > { %v468_v17 = vadd.f32 1.0, %v461_v15  ;;  %v472_v18 = vadd.f32 1.0, %v467_v16 }
  0x52   : > { %v469_v19 = vmul.f32 16.0, %v468_v17  ;;  %v473_v20 = vmul.f32 16.0, %v472_v18  ;;  %v2368_v17 = vadd.s32 8, %v2293_v30 }
  0x54   : > { %v1796_v21 = vadd.f32 -1.0, %v469_v19  ;;  %v1797_v22 = vadd.f32 -1.0, %v473_v20 }
  0x56   : > { %v471_v23 = vmul.f32 0.5, %v1796_v21  ;;  %v475_v24 = vmul.f32 0.5, %v1797_v22 }
  0x58   : > { %v476_v26 = vfloor.f32 %v471_v23  ;;  %v478_v27 = vfloor.f32 %v475_v24 }
  0x5a   : > { %v477_v28 = vadd.f32 1.0, %v476_v26  ;;  %v2291_v29 = vsub.f32 %v471_v23, %v476_v26  ;;  %vm521_vm0 = vcmp.ge.f32.partialorder %v476_v26, 0.0  ;;  %vm522_vm1 = vcmp.le.f32.partialorder %v476_v26, 15.0 }
  0x5b   : > { %vm524_vm2 = vcmp.ge.f32.partialorder %v478_v27, 0.0  ;;  %vm529_vm3 = vcmp.le.f32.partialorder %v478_v27, 15.0  ;;  %v2296_v32 = vsub.f32 %v475_v24, %v478_v27  ;;  %vm2300_vm4 = vmand %vm521_vm0, %vm522_vm1  ;;  %v534_v38 = vmax.f32 %v476_v26, 0.0 }
  0x5c   : > { %v481_v31 = vsub.f32 1.0, %v2291_v29  ;;  %v525_v33 = vsel %vm524_vm2, 1, %v2134_v0  ;;  %v530_v34 = vsel %vm529_vm3, 1, %v2134_v0  ;;  %v537_v39 = vmax.f32 %v478_v27, 0.0 }
  0x5d   : > { %v526_v36 = vrot.slane %v525_v33, 1  ;;  %v531_v37 = vrot.slane %v530_v34, 1  ;;  %v479_v40 = vadd.f32 1.0, %v478_v27  ;;  %vm657_vm5 = vcmp.ge.f32.partialorder %v477_v28, 0.0 }
  0x5e   : > { %vm658_vm6 = vcmp.le.f32.partialorder %v477_v28, 15.0  ;;  %v535_v43 = vmin.f32 %v534_v38, 15.0  ;;  %v538_v44 = vmin.f32 %v537_v39, 15.0  ;;  %v483_v46 = vsub.f32 1.0, %v2296_v32 }
  0x5f   : > { %vm2304_vm7 = vcmp.ne.s32.totalorder %v526_v36, 0  ;;  %vm2308_vm8 = vcmp.ne.s32.totalorder %v531_v37, 0  ;;  %vm2312_vm9 = vmand %vm657_vm5, %vm658_vm6  ;;  %v518_v47 = vrot.slane %v481_v31, 7  ;;  %v662_v49 = vmax.f32 %v477_v28, 0.0 }
  0x60   : > { %vm528_vm10 = vmand %vm2300_vm4, %vm2304_vm7  ;;  %v1951_v50 = vtrunc.f32 %v535_v43  ;;  %v1953_v51 = vtrunc.f32 %v538_v44  ;;  %vm810_vm12 = vcmp.ge.f32.partialorder %v479_v40, 0.0  ;;  %vm815_vm13 = vcmp.le.f32.partialorder %v479_v40, 15.0 }
  0x61   : > { %vm533_vm11 = vmand %vm528_vm10, %vm2308_vm8  ;;  %v663_v55 = vmin.f32 %v662_v49, 15.0  ;;  %v654_v58 = vrot.slane %v2291_v29, 7  ;;  %v811_v59 = vsel %vm810_vm12, 1, %v2134_v0  ;;  %v816_v63 = vsel %vm815_vm13, 1, %v2134_v0 }
  0x62   : > { %v579_v54 = vsel %vm533_vm11, 1, %v2134_v0  ;;  %vm660_vm14 = vmand %vm2312_vm9, %vm2304_vm7  ;;  %v1952_v56 = vcvt.f32.s32 %v1951_v50  ;;  %v1954_v57 = vcvt.f32.s32 %v1953_v51  ;;  %v812_v62 = vrot.slane %v811_v59, 1 }
  0x63   : > { %vm661_vm15 = vmand %vm660_vm14, %vm2308_vm8  ;;  %v1955_v60 = vtrunc.f32 %v663_v55  ;;  %v520_v1 = vmul.f32 %v518_v47, %v483_v46  ;;  %v583_v4 = vrot.slane %v579_v54, %v2322_v48  ;;  %v817_v7 = vrot.slane %v816_v63, 1  ;;  %v1191_v54 = vld [vmem:[%s3311_s4] sm:$0xff] }
  0x64   : > { %v703_v61 = vsel %vm661_vm15, 1, %v2134_v0  ;;  %v540_v2 = vmul.u32 16, %v1954_v57  ;;  %v541_v3 = vrot.slane %v1952_v56, 7  ;;  %vm2344_vm0 = vcmp.ne.s32.totalorder %v812_v62, 0  ;;  %1197 = vperm.xlu0 %2029, %v1191_v54  }
  0x65   : > { %v1956_v5 = vcvt.f32.s32 %v1955_v60  ;;  %v820_v8 = vmax.f32 %v479_v40, 0.0  ;;  %v656_v11 = vmul.f32 %v654_v58, %v483_v46  ;;  %v707_v12 = vrot.slane %v703_v61, %v2322_v48  ;;  %vm814_vm1 = vmand %vm2300_vm4, %vm2344_vm0 }
  0x66   : > { %v542_v10 = vadd.s32 %v541_v3, %v540_v2  ;;  %vm818_vm2 = vcmp.ne.s32.totalorder %v817_v7, 0  ;;  %vm968_vm3 = vmand %vm2312_vm9, %vm2344_vm0  ;;  %vm2363_vm5 = vcmp.eq.s32.totalorder %v583_v4, 1  ;;  %v2371_v18 = vrot.slane %v520_v1, %v2330_v53 }
  0x67   : > { %v665_v13 = vrot.slane %v1956_v5, 7  ;;  %v821_v14 = vmin.f32 %v820_v8, 15.0  ;;  %vm819_vm6 = vmand %vm814_vm1, %vm818_vm2  ;;  %vm2378_vm9 = vcmp.eq.s32.totalorder %v707_v12, 1  ;;  %v2383_v23 = vrot.slane %v656_v11, %v2330_v53 }
  0x68   : > { %v2361_v15 = vrot.slane %v542_v10, %v2330_v53  ;;  %v861_v21 = vsel %vm819_vm6, 1, %v2134_v0  ;;  %vm969_vm4 = vmand %vm968_vm3, %vm818_vm2  ;;  %v809_v29 = vmul.f32 %v518_v47, %v2296_v32  ;;  %v967_v33 = vmul.f32 %v654_v58, %v2296_v32 }
  0x69   : > { %v666_v19 = vadd.s32 %v665_v13, %v540_v2  ;;  %v1957_v20 = vtrunc.f32 %v821_v14  ;;  %v1007_v27 = vsel %vm969_vm4, 1, %v2134_v0  ;;  %v865_v31 = vrot.slane %v861_v21, %v2322_v48 }
  0x6a   : > { %vm563_vm7 = vcmp.eq.s32.totalorder %v2327_v52, %v2361_v15  ;;  %vm564_vm8 = vcmp.eq.s32.totalorder %v2349_v9, %v2361_v15  ;;  %vm547_vm11 = vcmp.eq.s32.totalorder %v2293_v30, %v2361_v15  ;;  %v2407_v34 = vadd.s32 144, %v2293_v30 }
  0x6b   : > { %vm2387_vm10 = vmand %vm563_vm7, %vm2363_vm5  ;;  %v2392_v25 = vrot.slane %v666_v19, %v2330_v53  ;;  %v1958_v26 = vcvt.f32.s32 %v1957_v20  ;;  %vm548_vm15 = vcmp.eq.s32.totalorder %v2368_v17, %v2361_v15  ;;  %v1011_v38 = vrot.slane %v1007_v27, %v2322_v48 }
  0x6c   : > { %vm2399_vm12 = vmand %vm564_vm8, %vm2363_vm5  ;;  %v637_v32 = vsel %vm2387_vm10, %v2371_v18, 0.0  ;;  %v2445_v43 = vrot.slane %v809_v29, %v2330_v53  ;;  %vm565_vm7 = vcmp.eq.s32.totalorder %v2407_v34, %v2361_v15  ;;  %vm2458_vm8 = vcmp.eq.s32.totalorder %v865_v31, 1 }
  0x6d   : > { %vm687_vm13 = vcmp.eq.s32.totalorder %v2327_v52, %v2392_v25  ;;  %vm688_vm14 = vcmp.eq.s32.totalorder %v2349_v9, %v2392_v25  ;;  %v823_v0 = vmul.u32 16, %v1958_v26  ;;  %vm2417_vm0 = vmand %vm547_vm11, %vm2363_vm5  ;;  %v638_v36 = vsel %vm2399_vm12, %v2371_v18, 0.0 }
  0x6e   : > { %vm2429_vm1 = vmand %vm687_vm13, %vm2378_vm9  ;;  %vm671_vm2 = vcmp.eq.s32.totalorder %v2293_v30, %v2392_v25  ;;  %vm672_vm6 = vcmp.eq.s32.totalorder %v2368_v17, %v2392_v25  ;;  %v2466_v48 = vrot.slane %v967_v33, %v2330_v53  ;;  %vm2474_vm11 = vcmp.eq.s32.totalorder %v1011_v38, 1 }
  0x6f   : > { %vm726_vm3 = vmand %vm688_vm14, %vm2378_vm9  ;;  %v761_v39 = vsel %vm2429_vm1, %v2383_v23, 0.0  ;;  %v824_v40 = vadd.s32 %v823_v0, %v541_v3  ;;  %v970_v41 = vadd.s32 %v823_v0, %v665_v13  ;;  %v621_v55 = vsel %vm2417_vm0, %v2371_v18, 0.0 }
  0x70   : > { %v762_v42 = vsel %vm726_vm3, %v2383_v23, 0.0  ;;  %vm2449_vm4 = vmand %vm548_vm15, %vm2363_vm5  ;;  %v793_v50 = vadd.f32 %v761_v39, %v637_v32  ;;  %v504_v60 = vadd.s32 152, %v2293_v30  ;;  %v2546_v10 = vadd.s32 16, %v2293_v30 }
  0x71   : > { %v2456_v45 = vrot.slane %v824_v40, %v2330_v53  ;;  %v2463_v47 = vrot.slane %v970_v41, %v2330_v53  ;;  %vm2470_vm10 = vmand %vm671_vm2, %vm2378_vm9  ;;  %v794_v51 = vadd.f32 %v762_v42, %v638_v36  ;;  %v488_v26 = vadd.s32 24, %v2293_v30 }
  0x72   : > { %vm2483_vm12 = vmand %vm672_vm6, %vm2378_vm9  ;;  %v745_v56 = vsel %vm2470_vm10, %v2383_v23, 0.0  ;;  %v505_v44 = vadd.s32 160, %v2293_v30 }
  0x73   : > { %vm845_vm13 = vcmp.eq.s32.totalorder %v2327_v52, %v2456_v45  ;;  %vm846_vm14 = vcmp.eq.s32.totalorder %v2349_v9, %v2456_v45  ;;  %vm991_vm15 = vcmp.eq.s32.totalorder %v2327_v52, %v2463_v47  ;;  %vm2501_vm0 = vmand %vm565_vm7, %vm2363_vm5  ;;  %vm992_vm2 = vcmp.eq.s32.totalorder %v2349_v9, %v2463_v47 }
  0x74   : > { %vm883_vm1 = vmand %vm845_vm13, %vm2458_vm8  ;;  %v622_v52 = vsel %vm2449_vm4, %v2371_v18, 0.0  ;;  %v746_v58 = vsel %vm2483_vm12, %v2383_v23, 0.0  ;;  %vm829_vm6 = vcmp.eq.s32.totalorder %v2293_v30, %v2456_v45  ;;  %v777_v63 = vadd.f32 %v745_v56, %v621_v55 }
  0x75   : > { %vm884_vm3 = vmand %vm846_vm14, %vm2458_vm8  ;;  %v919_v59 = vsel %vm883_vm1, %v2445_v43, 0.0  ;;  %vm830_vm7 = vcmp.eq.s32.totalorder %v2368_v17, %v2456_v45  ;;  %v778_v3 = vadd.f32 %v746_v58, %v622_v52  ;;  %vm975_vm12 = vcmp.eq.s32.totalorder %v2293_v30, %v2463_v47 }
  0x76   : > { %v920_v61 = vsel %vm884_vm3, %v2445_v43, 0.0  ;;  %v951_v62 = vadd.f32 %v919_v59, %v793_v50  ;;  %vm1029_vm4 = vmand %vm991_vm15, %vm2474_vm11  ;;  %vm976_vm14 = vcmp.eq.s32.totalorder %v2368_v17, %v2463_v47  ;;  %vm566_vm1 = vcmp.eq.s32.totalorder %v504_v60, %v2361_v15 }
  0x77   : > { %v952_v1 = vadd.f32 %v920_v61, %v794_v51  ;;  %vm1030_vm10 = vmand %vm992_vm2, %vm2474_vm11  ;;  %v1065_v2 = vsel %vm1029_vm4, %v2466_v48, 0.0  ;;  %vm689_vm3 = vcmp.eq.s32.totalorder %v2407_v34, %v2392_v25  ;;  %vm690_vm4 = vcmp.eq.s32.totalorder %v504_v60, %v2392_v25 }
  0x78   : > { %v1066_v4 = vsel %vm1030_vm10, %v2466_v48, 0.0  ;;  %v1097_v5 = vadd.f32 %v1065_v2, %v951_v62  ;;  %vm867_vm13 = vmand %vm829_vm6, %vm2458_vm8  ;;  %v639_v20 = vsel %vm2501_vm0, %v2371_v18, 0.0  ;;  %vm847_vm10 = vcmp.eq.s32.totalorder %v2407_v34, %v2456_v45 }
  0x79   : > { %v1098_v6 = vadd.f32 %v1066_v4, %v952_v1  ;;  %vm868_vm15 = vmand %vm830_vm7, %vm2458_vm8  ;;  %v903_v7 = vsel %vm867_vm13, %v2445_v43, 0.0  ;;  %vm848_vm13 = vcmp.eq.s32.totalorder %v504_v60, %v2456_v45  ;;  %v506_v50 = vadd.s32 168, %v2293_v30 }
  0x7a   : > { %v904_v8 = vsel %vm868_vm15, %v2445_v43, 0.0  ;;  %v935_v9 = vadd.f32 %v903_v7, %v777_v63  ;;  %vm1013_vm2 = vmand %vm975_vm12, %vm2474_vm11  ;;  %v490_v7 = vadd.s32 40, %v2293_v30 }
  0x7b   : > { %v1906_v11 = vpack.c.bf16 %v1098_v6, %v1097_v5  ;;  %v936_v12 = vadd.f32 %v904_v8, %v778_v3  ;;  %vm1014_vm6 = vmand %vm976_vm14, %vm2474_vm11  ;;  %v1049_v13 = vsel %vm1013_vm2, %v2466_v48, 0.0  ;;  %vm993_vm14 = vcmp.eq.s32.totalorder %v2407_v34, %v2463_v47 }
  0x7c   : > { %v1050_v14 = vsel %vm1014_vm6, %v2466_v48, 0.0  ;;  %v1081_v17 = vadd.f32 %v1049_v13, %v935_v9  ;;  %vm2555_vm7 = vmand %vm566_vm1, %vm2363_vm5  ;;  %vm994_vm1 = vcmp.eq.s32.totalorder %v504_v60, %v2463_v47  ;;  %v489_v5 = vadd.s32 32, %v2293_v30 }
  0x7d   : > { %1907 = vmatprep.subr.bf16.mxu0 %v1906_v11  ;;  %v1082_v21 = vadd.f32 %v1050_v14, %v936_v12  ;;  %v640_v24 = vsel %vm2555_vm7, %v2371_v18, 0.0  ;;  %vm727_vm12 = vmand %vm689_vm3, %vm2378_vm9  ;;  %vm549_vm3 = vcmp.eq.s32.totalorder %v2546_v10, %v2361_v15 }
  0x7e   : > { %vm728_vm0 = vmand %vm690_vm4, %vm2378_vm9  ;;  %v763_v27 = vsel %vm727_vm12, %v2383_v23, 0.0  ;;  %vm550_vm4 = vcmp.eq.s32.totalorder %v488_v26, %v2361_v15 }
  0x7f   : > { %v1908_v28 = vpack.c.bf16 %v1082_v21, %v1081_v17  ;;  %v764_v29 = vsel %vm728_vm0, %v2383_v23, 0.0  ;;  %v795_v31 = vadd.f32 %v763_v27, %v639_v20  ;;  %vm885_vm15 = vmand %vm847_vm10, %vm2458_vm8  ;;  %vm673_vm10 = vcmp.eq.s32.totalorder %v2546_v10, %v2392_v25 }
  0x80   : > { %v796_v33 = vadd.f32 %v764_v29, %v640_v24  ;;  %vm886_vm2 = vmand %vm848_vm13, %vm2458_vm8  ;;  %v921_v0 = vsel %vm885_vm15, %v2445_v43, 0.0  ;;  %vm674_vm13 = vcmp.eq.s32.totalorder %v488_v26, %v2392_v25 }
  0x81   : > { %1909 = vmatpush3.bf16.msra.mxu0 %v1908_v28  ;;  %v922_v34 = vsel %vm886_vm2, %v2445_v43, 0.0  ;;  %v953_v35 = vadd.f32 %v921_v0, %v795_v31  ;;  %vm1031_vm6 = vmand %vm993_vm14, %vm2474_vm11  ;;  %vm831_vm14 = vcmp.eq.s32.totalorder %v2546_v10, %v2456_v45  ;;  %v507_v31 = vadd.s32 176, %v2293_v30 }
  0x82   : > { %v954_v32 = vadd.f32 %v922_v34, %v796_v33  ;;  %vm1032_vm7 = vmand %vm994_vm1, %vm2474_vm11  ;;  %v1067_v36 = vsel %vm1031_vm6, %v2466_v48, 0.0  ;;  %vm832_vm1 = vcmp.eq.s32.totalorder %v488_v26, %v2456_v45  ;;  %v508_v0 = vadd.s32 184, %v2293_v30 }
  0x83   : > { %v1068_v37 = vsel %vm1032_vm7, %v2466_v48, 0.0  ;;  %v1099_v38 = vadd.f32 %v1067_v36, %v953_v35  ;;  %vm2600_vm12 = vmand %vm549_vm3, %vm2363_vm5  ;;  %vm977_vm3 = vcmp.eq.s32.totalorder %v2546_v10, %v2463_v47 }
  0x84   : > { %v1100_v40 = vadd.f32 %v1068_v37, %v954_v32  ;;  %vm2607_vm0 = vmand %vm550_vm4, %vm2363_vm5  ;;  %v623_v42 = vsel %vm2600_vm12, %v2371_v18, 0.0  ;;  %vm978_vm4 = vcmp.eq.s32.totalorder %v488_v26, %v2463_v47 }
  0x85   : > { %v624_v49 = vsel %vm2607_vm0, %v2371_v18, 0.0  ;;  %vm711_vm15 = vmand %vm673_vm10, %vm2378_vm9  ;;  %vm567_vm10 = vcmp.eq.s32.totalorder %v505_v44, %v2361_v15 }
  0x86   : > { %v1910_v51 = vpack.c.bf16 %v1100_v40, %v1099_v38  ;;  %vm712_vm2 = vmand %vm674_vm13, %vm2378_vm9  ;;  %v747_v55 = vsel %vm711_vm15, %v2383_v23, 0.0  ;;  %vm568_vm13 = vcmp.eq.s32.totalorder %v506_v50, %v2361_v15 }
  0x87   : > { %v748_v53 = vsel %vm712_vm2, %v2383_v23, 0.0  ;;  %v779_v56 = vadd.f32 %v747_v55, %v623_v42  ;;  %vm869_vm6 = vmand %vm831_vm14, %vm2458_vm8  ;;  %vm691_vm14 = vcmp.eq.s32.totalorder %v505_v44, %v2392_v25 }
  0x88   : > { %1911 = vmatprep.subr.bf16.mxu0 %v1910_v51  ;;  %v780_v57 = vadd.f32 %v748_v53, %v624_v49  ;;  %vm870_vm7 = vmand %vm832_vm1, %vm2458_vm8  ;;  %v905_v52 = vsel %vm869_vm6, %v2445_v43, 0.0  ;;  %vm692_vm1 = vcmp.eq.s32.totalorder %v506_v50, %v2392_v25 }
  0x89   : > { %v906_v58 = vsel %vm870_vm7, %v2445_v43, 0.0  ;;  %v937_v59 = vadd.f32 %v905_v52, %v779_v56  ;;  %vm1015_vm12 = vmand %vm977_vm3, %vm2474_vm11  ;;  %vm849_vm3 = vcmp.eq.s32.totalorder %v505_v44, %v2456_v45  ;;  %v491_v56 = vadd.s32 48, %v2293_v30 }
  0x8a   : > { %v938_v60 = vadd.f32 %v906_v58, %v780_v57  ;;  %vm1016_vm0 = vmand %vm978_vm4, %vm2474_vm11  ;;  %v1051_v61 = vsel %vm1015_vm12, %v2466_v48, 0.0  ;;  %vm850_vm4 = vcmp.eq.s32.totalorder %v506_v50, %v2456_v45  ;;  %v492_v52 = vadd.s32 56, %v2293_v30 }
  0x8b   : > { %v1052_v62 = vsel %vm1016_vm0, %v2466_v48, 0.0  ;;  %v1083_v63 = vadd.f32 %v1051_v61, %v937_v59  ;;  %vm2648_vm15 = vmand %vm567_vm10, %vm2363_vm5  ;;  %vm995_vm10 = vcmp.eq.s32.totalorder %v505_v44, %v2463_v47 }
  0x8c   : > { %v1084_v2 = vadd.f32 %v1052_v62, %v938_v60  ;;  %vm2655_vm2 = vmand %vm568_vm13, %vm2363_vm5  ;;  %v641_v4 = vsel %vm2648_vm15, %v2371_v18, 0.0  ;;  %vm996_vm13 = vcmp.eq.s32.totalorder %v506_v50, %v2463_v47 }
  0x8d   : > { %v642_v6 = vsel %vm2655_vm2, %v2371_v18, 0.0  ;;  %vm729_vm6 = vmand %vm691_vm14, %vm2378_vm9  ;;  %vm551_vm14 = vcmp.eq.s32.totalorder %v489_v5, %v2361_v15 }
  0x8e   : > { %v1912_v8 = vpack.c.bf16 %v1084_v2, %v1083_v63  ;;  %vm730_vm7 = vmand %vm692_vm1, %vm2378_vm9  ;;  %v765_v9 = vsel %vm729_vm6, %v2383_v23, 0.0  ;;  %vm552_vm1 = vcmp.eq.s32.totalorder %v490_v7, %v2361_v15 }
  0x8f   : > { %v766_v10 = vsel %vm730_vm7, %v2383_v23, 0.0  ;;  %v797_v11 = vadd.f32 %v765_v9, %v641_v4  ;;  %vm887_vm12 = vmand %vm849_vm3, %vm2458_vm8  ;;  %vm675_vm3 = vcmp.eq.s32.totalorder %v489_v5, %v2392_v25 }
  0x90   : > { %1913 = vmatpush3.bf16.msra.mxu0 %v1912_v8  ;;  %v798_v12 = vadd.f32 %v766_v10, %v642_v6  ;;  %vm888_vm0 = vmand %vm850_vm4, %vm2458_vm8  ;;  %v923_v13 = vsel %vm887_vm12, %v2445_v43, 0.0  ;;  %vm676_vm4 = vcmp.eq.s32.totalorder %v490_v7, %v2392_v25 }
  0x91   : > { %v924_v14 = vsel %vm888_vm0, %v2445_v43, 0.0  ;;  %v955_v17 = vadd.f32 %v923_v13, %v797_v11  ;;  %vm1033_vm15 = vmand %vm995_vm10, %vm2474_vm11  ;;  %vm833_vm10 = vcmp.eq.s32.totalorder %v489_v5, %v2456_v45  ;;  %v509_v11 = vadd.s32 192, %v2293_v30 }
  0x92   : > { %v956_v19 = vadd.f32 %v924_v14, %v798_v12  ;;  %vm1034_vm2 = vmand %vm996_vm13, %vm2474_vm11  ;;  %v1069_v20 = vsel %vm1033_vm15, %v2466_v48, 0.0  ;;  %vm834_vm13 = vcmp.eq.s32.totalorder %v490_v7, %v2456_v45  ;;  %v510_v13 = vadd.s32 200, %v2293_v30 }
  0x93   : > { %v1070_v21 = vsel %vm1034_vm2, %v2466_v48, 0.0  ;;  %v1101_v24 = vadd.f32 %v1069_v20, %v955_v17  ;;  %vm2694_vm6 = vmand %vm551_vm14, %vm2363_vm5  ;;  %vm979_vm14 = vcmp.eq.s32.totalorder %v489_v5, %v2463_v47 }
  0x94   : > { %v1102_v27 = vadd.f32 %v1070_v21, %v956_v19  ;;  %vm2701_vm7 = vmand %vm552_vm1, %vm2363_vm5  ;;  %v625_v29 = vsel %vm2694_vm6, %v2371_v18, 0.0  ;;  %vm980_vm1 = vcmp.eq.s32.totalorder %v490_v7, %v2463_v47  ;;  %v2817_v19 = vld [vmem:[%s440_s25] sm:$0xff]  ;;  %s1791_s25 = sshll.u32 %s426_s21, 3 }
  0x95   : > { %v626_v33 = vsel %vm2701_vm7, %v2371_v18, 0.0  ;;  %vm713_vm12 = vmand %vm675_vm3, %vm2378_vm9  ;;  %vm569_vm3 = vcmp.eq.s32.totalorder %v507_v31, %v2361_v15  ;;  %s428_s28 = scalar_lea.vmem [#allocation5], %s1791_s25 }
  0x96   : > { %v1914_v34 = vpack.c.bf16 %v1102_v27, %v1101_v24  ;;  %vm714_vm0 = vmand %vm676_vm4, %vm2378_vm9  ;;  %v749_v35 = vsel %vm713_vm12, %v2383_v23, 0.0  ;;  %vm570_vm4 = vcmp.eq.s32.totalorder %v508_v0, %v2361_v15  ;;  %s1689_s12 = sshll.u32 %s428_s28, 4  ;;  %s3262_s12 = int_to_ptr.vmem [resolvable:$true] %s1689_s12 }
  0x97   : > { %v750_v32 = vsel %vm714_vm0, %v2383_v23, 0.0  ;;  %v781_v36 = vadd.f32 %v749_v35, %v625_v29  ;;  %vm871_vm15 = vmand %vm833_vm10, %vm2458_vm8  ;;  %vm693_vm10 = vcmp.eq.s32.totalorder %v507_v31, %v2392_v25  ;;  %v1115_v29 = vcombine.high %v2817_v19, %v2817_v19  ;;  %s2049_s24 = scalar_lea.vmem %s3262_s12, 128  ;;  %p2056_p0 = scmp.lt.s32.totalorder %s3262_s12, %s2054_s1 }
  0x98   : > { %1915 = vmatprep.subr.bf16.mxu0 %v1914_v34  ;;  %v782_v37 = vadd.f32 %v750_v32, %v626_v33  ;;  %vm872_vm2 = vmand %vm834_vm13, %vm2458_vm8  ;;  %v907_v38 = vsel %vm871_vm15, %v2445_v43, 0.0  ;;  %vm694_vm13 = vcmp.eq.s32.totalorder %v508_v0, %v2392_v25  ;;  %p2050_p10 = scmp.ne.s32.totalorder %s3262_s12, %s2049_s24  ;;  %p2057_p1 = scmp.lt.s32.totalorder %s2055_s20, %s2049_s24 }
  0x99   : > { %v908_v39 = vsel %vm872_vm2, %v2445_v43, 0.0  ;;  %v939_v40 = vadd.f32 %v907_v38, %v781_v36  ;;  %vm1017_vm6 = vmand %vm979_vm14, %vm2474_vm11  ;;  %vm851_vm14 = vcmp.eq.s32.totalorder %v507_v31, %v2456_v45  ;;  %1181 = vmatprep.mubr.f32.mxu0 %v1115_v29  ;;  %v493_v38 = vadd.s32 64, %v2293_v30 }
  0x9a   : > { %v940_v41 = vadd.f32 %v908_v39, %v782_v37  ;;  %vm1018_vm7 = vmand %vm980_vm1, %vm2474_vm11  ;;  %v1053_v42 = vsel %vm1017_vm6, %v2466_v48, 0.0  ;;  %vm852_vm1 = vcmp.eq.s32.totalorder %v508_v0, %v2456_v45  ;;  %p2051_p11 = pnand %p2050_p10, %p2239_p4  ;;  %p2058_p2 = por %p2057_p1, %p2056_p0 }
  0x9b   : > { %v1054_v44 = vsel %vm1018_vm7, %v2466_v48, 0.0  ;;  %v1085_v49 = vadd.f32 %v1053_v42, %v939_v40  ;;  %vm2740_vm12 = vmand %vm569_vm3, %vm2363_vm5  ;;  %vm997_vm3 = vcmp.eq.s32.totalorder %v507_v31, %v2463_v47  ;;  %v494_v40 = vadd.s32 72, %v2293_v30 }
  0x9c   : > { %v1086_v51 = vadd.f32 %v1054_v44, %v940_v41  ;;  %vm2747_vm0 = vmand %vm570_vm4, %vm2363_vm5  ;;  %v643_v53 = vsel %vm2740_vm12, %v2371_v18, 0.0  ;;  %vm998_vm4 = vcmp.eq.s32.totalorder %v508_v0, %v2463_v47  ;;  %p2052_p13 = pneg %p2051_p11 }
  0x9d   : > { %v644_v57 = vsel %vm2747_vm0, %v2371_v18, 0.0  ;;  %vm731_vm15 = vmand %vm693_vm10, %vm2378_vm9  ;;  %vm553_vm10 = vcmp.eq.s32.totalorder %v491_v56, %v2361_v15 }
  0x9e   : > { %v1916_v58 = vpack.c.bf16 %v1086_v51, %v1085_v49  ;;  %vm732_vm2 = vmand %vm694_vm13, %vm2378_vm9  ;;  %v767_v59 = vsel %vm731_vm15, %v2383_v23, 0.0  ;;  %vm554_vm13 = vcmp.eq.s32.totalorder %v492_v52, %v2361_v15  ;;  %p2059_p3 = pnand %p2058_p2, %p2052_p13 }
  0x9f   : > { %v768_v60 = vsel %vm732_vm2, %v2383_v23, 0.0  ;;  %v799_v61 = vadd.f32 %v767_v59, %v643_v53  ;;  %vm889_vm6 = vmand %vm851_vm14, %vm2458_vm8  ;;  %vm677_vm14 = vcmp.eq.s32.totalorder %v491_v56, %v2392_v25 }
  0xa0   : > { %1917 = vmatpush3.bf16.msra.mxu0 %v1916_v58  ;;  %v800_v62 = vadd.f32 %v768_v60, %v644_v57  ;;  %vm890_vm7 = vmand %vm852_vm1, %vm2458_vm8  ;;  %v925_v63 = vsel %vm889_vm6, %v2445_v43, 0.0  ;;  %vm678_vm1 = vcmp.eq.s32.totalorder %v492_v52, %v2392_v25 }
  0xa1   : > { %v926_v1 = vsel %vm890_vm7, %v2445_v43, 0.0  ;;  %v957_v2 = vadd.f32 %v925_v63, %v799_v61  ;;  %vm1035_vm12 = vmand %vm997_vm3, %vm2474_vm11  ;;  %vm835_vm3 = vcmp.eq.s32.totalorder %v491_v56, %v2456_v45  ;;  %v511_v63 = vadd.s32 208, %v2293_v30 }
  0xa2   : > { %v958_v3 = vadd.f32 %v926_v1, %v800_v62  ;;  %vm1036_vm0 = vmand %vm998_vm4, %vm2474_vm11  ;;  %v1071_v4 = vsel %vm1035_vm12, %v2466_v48, 0.0  ;;  %vm836_vm4 = vcmp.eq.s32.totalorder %v492_v52, %v2456_v45 }
  0xa3   : > { %v1072_v5 = vsel %vm1036_vm0, %v2466_v48, 0.0  ;;  %v1103_v6 = vadd.f32 %v1071_v4, %v957_v2  ;;  %vm2787_vm15 = vmand %vm553_vm10, %vm2363_vm5  ;;  %vm981_vm10 = vcmp.eq.s32.totalorder %v491_v56, %v2463_v47  ;;  %v512_v2 = vadd.s32 216, %v2293_v30 }
  0xa4   : > { %v1104_v8 = vadd.f32 %v1072_v5, %v958_v3  ;;  %vm2797_vm2 = vmand %vm554_vm13, %vm2363_vm5  ;;  %v627_v10 = vsel %vm2787_vm15, %v2371_v18, 0.0  ;;  %vm982_vm13 = vcmp.eq.s32.totalorder %v492_v52, %v2463_v47 }
  0xa5   : > { %v628_v12 = vsel %vm2797_vm2, %v2371_v18, 0.0  ;;  %vm715_vm6 = vmand %vm677_vm14, %vm2378_vm9  ;;  %vm571_vm14 = vcmp.eq.s32.totalorder %v509_v11, %v2361_v15 }
  0xa6   : > { %v1918_v14 = vpack.c.bf16 %v1104_v8, %v1103_v6  ;;  %vm716_vm7 = vmand %vm678_vm1, %vm2378_vm9  ;;  %v751_v17 = vsel %vm715_vm6, %v2383_v23, 0.0  ;;  %vm572_vm1 = vcmp.eq.s32.totalorder %v510_v13, %v2361_v15 }
  0xa7   : > { %v752_v20 = vsel %vm716_vm7, %v2383_v23, 0.0  ;;  %v783_v21 = vadd.f32 %v751_v17, %v627_v10  ;;  %vm873_vm12 = vmand %vm835_vm3, %vm2458_vm8  ;;  %vm695_vm3 = vcmp.eq.s32.totalorder %v509_v11, %v2392_v25 }
  0xa8   : > { %1919 = vmatprep.subr.bf16.mxu0 %v1918_v14  ;;  %v784_v24 = vadd.f32 %v752_v20, %v628_v12  ;;  %vm874_vm0 = vmand %vm836_vm4, %vm2458_vm8  ;;  %v909_v26 = vsel %vm873_vm12, %v2445_v43, 0.0  ;;  %vm696_vm4 = vcmp.eq.s32.totalorder %v510_v13, %v2392_v25 }
  0xa9   : > { %v910_v27 = vsel %vm874_vm0, %v2445_v43, 0.0  ;;  %v941_v28 = vadd.f32 %v909_v26, %v783_v21  ;;  %vm1019_vm15 = vmand %vm981_vm10, %vm2474_vm11  ;;  %vm853_vm10 = vcmp.eq.s32.totalorder %v509_v11, %v2456_v45  ;;  %v495_v26 = vadd.s32 80, %v2293_v30 }
  0xaa   : > { %v942_v31 = vadd.f32 %v910_v27, %v784_v24  ;;  %vm1020_vm2 = vmand %vm982_vm13, %vm2474_vm11  ;;  %v1055_v33 = vsel %vm1019_vm15, %v2466_v48, 0.0  ;;  %vm854_vm13 = vcmp.eq.s32.totalorder %v510_v13, %v2456_v45 }
  0xab   : > { %v1056_v0 = vsel %vm1020_vm2, %v2466_v48, 0.0  ;;  %v1087_v34 = vadd.f32 %v1055_v33, %v941_v28  ;;  %vm2840_vm6 = vmand %vm571_vm14, %vm2363_vm5  ;;  %vm999_vm14 = vcmp.eq.s32.totalorder %v509_v11, %v2463_v47  ;;  %v496_v28 = vadd.s32 88, %v2293_v30 }
  0xac   : > { %v1088_v32 = vadd.f32 %v1056_v0, %v942_v31  ;;  %vm2847_vm7 = vmand %vm572_vm1, %vm2363_vm5  ;;  %v645_v37 = vsel %vm2840_vm6, %v2371_v18, 0.0  ;;  %vm1000_vm1 = vcmp.eq.s32.totalorder %v510_v13, %v2463_v47 }
  0xad   : > { %v646_v39 = vsel %vm2847_vm7, %v2371_v18, 0.0  ;;  %vm733_vm12 = vmand %vm695_vm3, %vm2378_vm9  ;;  %vm555_vm3 = vcmp.eq.s32.totalorder %v493_v38, %v2361_v15 }
  0xae   : > { %v1920_v41 = vpack.c.bf16 %v1088_v32, %v1087_v34  ;;  %vm734_vm0 = vmand %vm696_vm4, %vm2378_vm9  ;;  %v769_v42 = vsel %vm733_vm12, %v2383_v23, 0.0  ;;  %vm556_vm4 = vcmp.eq.s32.totalorder %v494_v40, %v2361_v15 }
  0xaf   : > { %v770_v44 = vsel %vm734_vm0, %v2383_v23, 0.0  ;;  %v801_v49 = vadd.f32 %v769_v42, %v645_v37  ;;  %vm891_vm15 = vmand %vm853_vm10, %vm2458_vm8  ;;  %vm679_vm10 = vcmp.eq.s32.totalorder %v493_v38, %v2392_v25 }
  0xb0   : > { %1921 = vmatpush3.bf16.msra.mxu0 %v1920_v41  ;;  %v802_v50 = vadd.f32 %v770_v44, %v646_v39  ;;  %vm892_vm2 = vmand %vm854_vm13, %vm2458_vm8  ;;  %v927_v51 = vsel %vm891_vm15, %v2445_v43, 0.0  ;;  %vm680_vm13 = vcmp.eq.s32.totalorder %v494_v40, %v2392_v25 }
  0xb1   : > { %v928_v55 = vsel %vm892_vm2, %v2445_v43, 0.0  ;;  %v959_v53 = vadd.f32 %v927_v51, %v801_v49  ;;  %vm1037_vm6 = vmand %vm999_vm14, %vm2474_vm11  ;;  %vm837_vm14 = vcmp.eq.s32.totalorder %v493_v38, %v2456_v45 }
  0xb2   : > { %v960_v56 = vadd.f32 %v928_v55, %v802_v50  ;;  %vm1038_vm7 = vmand %vm1000_vm1, %vm2474_vm11  ;;  %v1073_v57 = vsel %vm1037_vm6, %v2466_v48, 0.0  ;;  %vm838_vm1 = vcmp.eq.s32.totalorder %v494_v40, %v2456_v45  ;;  %v513_v50 = vadd.s32 224, %v2293_v30 }
  0xb3   : > { %v1074_v52 = vsel %vm1038_vm7, %v2466_v48, 0.0  ;;  %v1105_v58 = vadd.f32 %v1073_v57, %v959_v53  ;;  %vm2886_vm12 = vmand %vm555_vm3, %vm2363_vm5  ;;  %vm983_vm3 = vcmp.eq.s32.totalorder %v493_v38, %v2463_v47  ;;  %v514_v55 = vadd.s32 232, %v2293_v30 }
  0xb4   : > { %v1106_v60 = vadd.f32 %v1074_v52, %v960_v56  ;;  %vm2893_vm0 = vmand %vm556_vm4, %vm2363_vm5  ;;  %v629_v62 = vsel %vm2886_vm12, %v2371_v18, 0.0  ;;  %vm984_vm4 = vcmp.eq.s32.totalorder %v494_v40, %v2463_v47 }
  0xb5   : > { %v630_v1 = vsel %vm2893_vm0, %v2371_v18, 0.0  ;;  %vm717_vm15 = vmand %vm679_vm10, %vm2378_vm9  ;;  %vm573_vm10 = vcmp.eq.s32.totalorder %v511_v63, %v2361_v15 }
  0xb6   : > { %v1922_v3 = vpack.c.bf16 %v1106_v60, %v1105_v58  ;;  %vm718_vm2 = vmand %vm680_vm13, %vm2378_vm9  ;;  %v753_v4 = vsel %vm717_vm15, %v2383_v23, 0.0  ;;  %vm574_vm13 = vcmp.eq.s32.totalorder %v512_v2, %v2361_v15 }
  0xb7   : > { %v754_v5 = vsel %vm718_vm2, %v2383_v23, 0.0  ;;  %v785_v6 = vadd.f32 %v753_v4, %v629_v62  ;;  %vm875_vm6 = vmand %vm837_vm14, %vm2458_vm8  ;;  %vm697_vm14 = vcmp.eq.s32.totalorder %v511_v63, %v2392_v25 }
  0xb8   : > { %1923 = vmatprep.subr.bf16.mxu0 %v1922_v3  ;;  %v786_v7 = vadd.f32 %v754_v5, %v630_v1  ;;  %vm876_vm7 = vmand %vm838_vm1, %vm2458_vm8  ;;  %v911_v8 = vsel %vm875_vm6, %v2445_v43, 0.0  ;;  %vm698_vm1 = vcmp.eq.s32.totalorder %v512_v2, %v2392_v25 }
  0xb9   : > { %v912_v9 = vsel %vm876_vm7, %v2445_v43, 0.0  ;;  %v943_v10 = vadd.f32 %v911_v8, %v785_v6  ;;  %vm1021_vm12 = vmand %vm983_vm3, %vm2474_vm11  ;;  %vm855_vm3 = vcmp.eq.s32.totalorder %v511_v63, %v2456_v45 }
  0xba   : > { %v944_v11 = vadd.f32 %v912_v9, %v786_v7  ;;  %vm1022_vm0 = vmand %vm984_vm4, %vm2474_vm11  ;;  %v1057_v12 = vsel %vm1021_vm12, %v2466_v48, 0.0  ;;  %vm856_vm4 = vcmp.eq.s32.totalorder %v512_v2, %v2456_v45  ;;  %v497_v7 = vadd.s32 96, %v2293_v30 }
  0xbb   : > { %v1058_v13 = vsel %vm1022_vm0, %v2466_v48, 0.0  ;;  %v1089_v14 = vadd.f32 %v1057_v12, %v943_v10  ;;  %vm2932_vm15 = vmand %vm573_vm10, %vm2363_vm5  ;;  %vm1001_vm10 = vcmp.eq.s32.totalorder %v511_v63, %v2463_v47  ;;  %v498_v9 = vadd.s32 104, %v2293_v30 }
  0xbc   : > { %v1090_v20 = vadd.f32 %v1058_v13, %v944_v11  ;;  %vm2939_vm2 = vmand %vm574_vm13, %vm2363_vm5  ;;  %v647_v24 = vsel %vm2932_vm15, %v2371_v18, 0.0  ;;  %vm1002_vm13 = vcmp.eq.s32.totalorder %v512_v2, %v2463_v47 }
  0xbd   : > { %v648_v27 = vsel %vm2939_vm2, %v2371_v18, 0.0  ;;  %vm735_vm6 = vmand %vm697_vm14, %vm2378_vm9  ;;  %vm557_vm14 = vcmp.eq.s32.totalorder %v495_v26, %v2361_v15 }
  0xbe   : > { %v1924_v29 = vpack.c.bf16 %v1090_v20, %v1089_v14  ;;  %vm736_vm7 = vmand %vm698_vm1, %vm2378_vm9  ;;  %v771_v31 = vsel %vm735_vm6, %v2383_v23, 0.0  ;;  %vm558_vm1 = vcmp.eq.s32.totalorder %v496_v28, %v2361_v15 }
  0xbf   : > { %v772_v33 = vsel %vm736_vm7, %v2383_v23, 0.0  ;;  %v803_v0 = vadd.f32 %v771_v31, %v647_v24  ;;  %vm893_vm12 = vmand %vm855_vm3, %vm2458_vm8  ;;  %vm681_vm3 = vcmp.eq.s32.totalorder %v495_v26, %v2392_v25 }
  0xc0   : > { %1925 = vmatpush3.bf16.msra.mxu0 %v1924_v29  ;;  %v804_v34 = vadd.f32 %v772_v33, %v648_v27  ;;  %vm894_vm0 = vmand %vm856_vm4, %vm2458_vm8  ;;  %v929_v35 = vsel %vm893_vm12, %v2445_v43, 0.0  ;;  %vm682_vm4 = vcmp.eq.s32.totalorder %v496_v28, %v2392_v25  ;;  %v1188_v33 = vld [vmem:[%s3310_s3 + $0x8] sm:$0xff] }
  0xc1   : > { %v930_v32 = vsel %vm894_vm0, %v2445_v43, 0.0  ;;  %v961_v36 = vadd.f32 %v929_v35, %v803_v0  ;;  %vm1039_vm15 = vmand %vm1001_vm10, %vm2474_vm11  ;;  %vm839_vm10 = vcmp.eq.s32.totalorder %v495_v26, %v2456_v45 }
  0xc2   : > { %v962_v37 = vadd.f32 %v930_v32, %v804_v34  ;;  %vm1040_vm2 = vmand %vm1002_vm13, %vm2474_vm11  ;;  %v1075_v38 = vsel %vm1039_vm15, %v2466_v48, 0.0  ;;  %vm840_vm13 = vcmp.eq.s32.totalorder %v496_v28, %v2456_v45  ;;  %v515_v34 = vadd.s32 240, %v2293_v30 }
  0xc3   : > { %v1076_v39 = vsel %vm1040_vm2, %v2466_v48, 0.0  ;;  %v1107_v40 = vadd.f32 %v1075_v38, %v961_v36  ;;  %vm2978_vm6 = vmand %vm557_vm14, %vm2363_vm5  ;;  %vm985_vm14 = vcmp.eq.s32.totalorder %v495_v26, %v2463_v47  ;;  %v516_v32 = vadd.s32 248, %v2293_v30 }
  0xc4   : > { %v1108_v42 = vadd.f32 %v1076_v39, %v962_v37  ;;  %vm2985_vm7 = vmand %vm558_vm1, %vm2363_vm5  ;;  %v631_v49 = vsel %vm2978_vm6, %v2371_v18, 0.0  ;;  %vm986_vm1 = vcmp.eq.s32.totalorder %v496_v28, %v2463_v47 }
  0xc5   : > { %v632_v51 = vsel %vm2985_vm7, %v2371_v18, 0.0  ;;  %vm719_vm12 = vmand %vm681_vm3, %vm2378_vm9  ;;  %vm575_vm3 = vcmp.eq.s32.totalorder %v513_v50, %v2361_v15 }
  0xc6   : > { %v1926_v53 = vpack.c.bf16 %v1108_v42, %v1107_v40  ;;  %vm720_vm0 = vmand %vm682_vm4, %vm2378_vm9  ;;  %v755_v56 = vsel %vm719_vm12, %v2383_v23, 0.0  ;;  %vm576_vm4 = vcmp.eq.s32.totalorder %v514_v55, %v2361_v15 }
  0xc7   : > { %v756_v57 = vsel %vm720_vm0, %v2383_v23, 0.0  ;;  %v787_v52 = vadd.f32 %v755_v56, %v631_v49  ;;  %vm877_vm15 = vmand %vm839_vm10, %vm2458_vm8  ;;  %vm699_vm10 = vcmp.eq.s32.totalorder %v513_v50, %v2392_v25 }
  0xc8   : > { %1927 = vmatprep.subr.bf16.mxu0 %v1926_v53  ;;  %v788_v58 = vadd.f32 %v756_v57, %v632_v51  ;;  %vm878_vm2 = vmand %vm840_vm13, %vm2458_vm8  ;;  %v913_v59 = vsel %vm877_vm15, %v2445_v43, 0.0  ;;  %vm700_vm13 = vcmp.eq.s32.totalorder %v514_v55, %v2392_v25 }
  0xc9   : > { %v914_v60 = vsel %vm878_vm2, %v2445_v43, 0.0  ;;  %v945_v61 = vadd.f32 %v913_v59, %v787_v52  ;;  %vm1023_vm6 = vmand %vm985_vm14, %vm2474_vm11  ;;  %vm857_vm14 = vcmp.eq.s32.totalorder %v513_v50, %v2456_v45 }
  0xca   : > { %v946_v62 = vadd.f32 %v914_v60, %v788_v58  ;;  %vm1024_vm7 = vmand %vm986_vm1, %vm2474_vm11  ;;  %v1059_v63 = vsel %vm1023_vm6, %v2466_v48, 0.0  ;;  %vm858_vm1 = vcmp.eq.s32.totalorder %v514_v55, %v2456_v45  ;;  %v499_v58 = vadd.s32 112, %v2293_v30 }
  0xcb   : > { %v1060_v1 = vsel %vm1024_vm7, %v2466_v48, 0.0  ;;  %v1091_v2 = vadd.f32 %v1059_v63, %v945_v61  ;;  %vm3024_vm12 = vmand %vm575_vm3, %vm2363_vm5  ;;  %vm1003_vm3 = vcmp.eq.s32.totalorder %v513_v50, %v2463_v47  ;;  %v500_v60 = vadd.s32 120, %v2293_v30 }
  0xcc   : > { %v1092_v4 = vadd.f32 %v1060_v1, %v946_v62  ;;  %vm3031_vm0 = vmand %vm576_vm4, %vm2363_vm5  ;;  %v649_v6 = vsel %vm3024_vm12, %v2371_v18, 0.0  ;;  %vm1004_vm4 = vcmp.eq.s32.totalorder %v514_v55, %v2463_v47 }
  0xcd   : > { %v650_v8 = vsel %vm3031_vm0, %v2371_v18, 0.0  ;;  %vm737_vm15 = vmand %vm699_vm10, %vm2378_vm9  ;;  %vm559_vm10 = vcmp.eq.s32.totalorder %v497_v7, %v2361_v15 }
  0xce   : > { %v1928_v10 = vpack.c.bf16 %v1092_v4, %v1091_v2  ;;  %vm738_vm2 = vmand %vm700_vm13, %vm2378_vm9  ;;  %v773_v11 = vsel %vm737_vm15, %v2383_v23, 0.0  ;;  %vm560_vm13 = vcmp.eq.s32.totalorder %v498_v9, %v2361_v15 }
  0xcf   : > { %v774_v12 = vsel %vm738_vm2, %v2383_v23, 0.0  ;;  %v805_v13 = vadd.f32 %v773_v11, %v649_v6  ;;  %vm895_vm6 = vmand %vm857_vm14, %vm2458_vm8  ;;  %vm683_vm14 = vcmp.eq.s32.totalorder %v497_v7, %v2392_v25 }
  0xd0   : > { %1929 = vmatpush3.bf16.msra.mxu0 %v1928_v10  ;;  %v806_v14 = vadd.f32 %v774_v12, %v650_v8  ;;  %vm896_vm7 = vmand %vm858_vm1, %vm2458_vm8  ;;  %v931_v17 = vsel %vm895_vm6, %v2445_v43, 0.0  ;;  %vm684_vm1 = vcmp.eq.s32.totalorder %v498_v9, %v2392_v25 }
  0xd1   : > { %v932_v20 = vsel %vm896_vm7, %v2445_v43, 0.0  ;;  %v963_v21 = vadd.f32 %v931_v17, %v805_v13  ;;  %vm1041_vm12 = vmand %vm1003_vm3, %vm2474_vm11  ;;  %vm841_vm3 = vcmp.eq.s32.totalorder %v497_v7, %v2456_v45 }
  0xd2   : > { %v964_v24 = vadd.f32 %v932_v20, %v806_v14  ;;  %vm1042_vm0 = vmand %vm1004_vm4, %vm2474_vm11  ;;  %v1077_v26 = vsel %vm1041_vm12, %v2466_v48, 0.0  ;;  %vm842_vm4 = vcmp.eq.s32.totalorder %v498_v9, %v2456_v45 }
  0xd3   : > { %v1078_v27 = vsel %vm1042_vm0, %v2466_v48, 0.0  ;;  %v1109_v28 = vadd.f32 %v1077_v26, %v963_v21  ;;  %vm3070_vm15 = vmand %vm559_vm10, %vm2363_vm5  ;;  %vm987_vm10 = vcmp.eq.s32.totalorder %v497_v7, %v2463_v47  ;;  %v1194_v21 = vld [vmem:[%s3311_s4 + $0x18] sm:$0xff]  ;;  %v1497_v26 = vld [vmem:[%s3314_s7 + $0x8] sm:$0xff] }
  0xd4   : > { %v1110_v31 = vadd.f32 %v1078_v27, %v964_v24  ;;  %vm3077_vm2 = vmand %vm560_vm13, %vm2363_vm5  ;;  %v633_v0 = vsel %vm3070_vm15, %v2371_v18, 0.0  ;;  %vm988_vm13 = vcmp.eq.s32.totalorder %v498_v9, %v2463_v47  ;;  %v1496_v24 = vld [vmem:[%s3314_s7] sm:$0xff] }
  0xd5   : > { %v634_v35 = vsel %vm3077_vm2, %v2371_v18, 0.0  ;;  %vm721_vm6 = vmand %vm683_vm14, %vm2378_vm9  ;;  %vm577_vm14 = vcmp.eq.s32.totalorder %v515_v34, %v2361_v15  ;;  %v1665_v27 = vld [vmem:[%s3317_s10] sm:$0xff] }
  0xd6   : > { %v1930_v36 = vpack.c.bf16 %v1110_v31, %v1109_v28  ;;  %vm722_vm7 = vmand %vm684_vm1, %vm2378_vm9  ;;  %v757_v37 = vsel %vm721_vm6, %v2383_v23, 0.0  ;;  %vm578_vm1 = vcmp.eq.s32.totalorder %v516_v32, %v2361_v15 }
  0xd7   : > { %v758_v38 = vsel %vm722_vm7, %v2383_v23, 0.0  ;;  %v789_v39 = vadd.f32 %v757_v37, %v633_v0  ;;  %vm879_vm12 = vmand %vm841_vm3, %vm2458_vm8  ;;  %vm701_vm3 = vcmp.eq.s32.totalorder %v515_v34, %v2392_v25  ;;  %v1189_v0 = vld [vmem:[%s3310_s3 + $0x10] sm:$0xff] }
  0xd8   : > { %1931 = vmatprep.subr.bf16.mxu0 %v1930_v36  ;;  %v790_v40 = vadd.f32 %v758_v38, %v634_v35  ;;  %vm880_vm0 = vmand %vm842_vm4, %vm2458_vm8  ;;  %v915_v41 = vsel %vm879_vm12, %v2445_v43, 0.0  ;;  %vm702_vm4 = vcmp.eq.s32.totalorder %v516_v32, %v2392_v25  ;;  %v1331_v35 = vld [vmem:[%s3313_s6] sm:$0xff] }
  0xd9   : > { %v916_v42 = vsel %vm880_vm0, %v2445_v43, 0.0  ;;  %v947_v44 = vadd.f32 %v915_v41, %v789_v39  ;;  %vm1025_vm15 = vmand %vm987_vm10, %vm2474_vm11  ;;  %vm859_vm10 = vcmp.eq.s32.totalorder %v515_v34, %v2456_v45  ;;  %v1329_v36 = vld [vmem:[%s3312_s5] sm:$0xff] }
  0xda   : > { %v948_v49 = vadd.f32 %v916_v42, %v790_v40  ;;  %vm1026_vm2 = vmand %vm988_vm13, %vm2474_vm11  ;;  %v1061_v50 = vsel %vm1025_vm15, %v2466_v48, 0.0  ;;  %vm860_vm13 = vcmp.eq.s32.totalorder %v516_v32, %v2456_v45 }
  0xdb   : > { %v1062_v51 = vsel %vm1026_vm2, %v2466_v48, 0.0  ;;  %v1093_v55 = vadd.f32 %v1061_v50, %v947_v44  ;;  %vm3116_vm6 = vmand %vm577_vm14, %vm2363_vm5  ;;  %vm1005_vm14 = vcmp.eq.s32.totalorder %v515_v34, %v2463_v47  ;;  %v1190_v34 = vld [vmem:[%s3310_s3 + $0x18] sm:$0xff] }
  0xdc   : > { %v1094_v56 = vadd.f32 %v1062_v51, %v948_v49  ;;  %vm3123_vm7 = vmand %vm578_vm1, %vm2363_vm5  ;;  %v651_v52 = vsel %vm3116_vm6, %v2371_v18, 0.0  ;;  %vm1006_vm1 = vcmp.eq.s32.totalorder %v516_v32, %v2463_v47  ;;  %v1332_v32 = vld [vmem:[%s3313_s6 + $0x8] sm:$0xff] }
  0xdd   : > { %v652_v59 = vsel %vm3123_vm7, %v2371_v18, 0.0  ;;  %vm739_vm12 = vmand %vm701_vm3, %vm2378_vm9  ;;  %vm561_vm3 = vcmp.eq.s32.totalorder %v499_v58, %v2361_v15 }
  0xde   : > { %v1932_v61 = vpack.c.bf16 %v1094_v56, %v1093_v55  ;;  %vm740_vm0 = vmand %vm702_vm4, %vm2378_vm9  ;;  %v775_v62 = vsel %vm739_vm12, %v2383_v23, 0.0  ;;  %vm562_vm4 = vcmp.eq.s32.totalorder %v500_v60, %v2361_v15 }
  0xdf   : > { %v776_v63 = vsel %vm740_vm0, %v2383_v23, 0.0  ;;  %v807_v1 = vadd.f32 %v775_v62, %v651_v52  ;;  %vm897_vm15 = vmand %vm859_vm10, %vm2458_vm8  ;;  %vm685_vm10 = vcmp.eq.s32.totalorder %v499_v58, %v2392_v25 }
  0xe0   : > { %1933 = vmatpush3.bf16.msra.mxu0 %v1932_v61  ;;  %v808_v2 = vadd.f32 %v776_v63, %v652_v59  ;;  %vm898_vm2 = vmand %vm860_vm13, %vm2458_vm8  ;;  %v933_v30 = vsel %vm897_vm15, %v2445_v43, 0.0  ;;  %vm686_vm13 = vcmp.eq.s32.totalorder %v500_v60, %v2392_v25 }
  0xe1   : > { %v934_v3 = vsel %vm898_vm2, %v2445_v43, 0.0  ;;  %v965_v4 = vadd.f32 %v933_v30, %v807_v1  ;;  %vm1043_vm6 = vmand %vm1005_vm14, %vm2474_vm11  ;;  %vm843_vm14 = vcmp.eq.s32.totalorder %v499_v58, %v2456_v45  ;;  %v2135_v30 = vmov 0.0  }
  0xe2   : > { %v966_v5 = vadd.f32 %v934_v3, %v808_v2  ;;  %vm1044_vm7 = vmand %vm1006_vm1, %vm2474_vm11  ;;  %v1079_v6 = vsel %vm1043_vm6, %v2466_v48, 0.0  ;;  %vm844_vm1 = vcmp.eq.s32.totalorder %v500_v60, %v2456_v45  ;;  %vm990_vm6 = vcmp.eq.s32.totalorder %v500_v60, %v2463_v47  ;;  %v1330_v2 = vld [vmem:[%s3312_s5 + $0x8] sm:$0xff]  ;;  %v1517_v3 = vld [vmem:[%s3316_s9] sm:$0xff] }
  0xe3   : > { %v1080_v7 = vsel %vm1044_vm7, %v2466_v48, 0.0  ;;  %v1111_v8 = vadd.f32 %v1079_v6, %v965_v4  ;;  %vm599_vm12 = vmand %vm561_vm3, %vm2363_vm5  ;;  %vm989_vm3 = vcmp.eq.s32.totalorder %v499_v58, %v2463_v47  ;;  %v1198_v37 = vpop.permute.xlu0 %1197  ;;  %v2137_v4 = vmov 0.0|0.0  }
  0xe4   : > { %v1112_v9 = vadd.f32 %v1080_v7, %v966_v5  ;;  %vm600_vm0 = vmand %vm562_vm4, %vm2363_vm5  ;;  %v635_v15 = vsel %vm599_vm12, %v2371_v18, 0.0 }
  0xe5   : > { %v636_v10 = vsel %vm600_vm0, %v2371_v18, 0.0  ;;  %vm723_vm15 = vmand %vm685_vm10, %vm2378_vm9  ;;  %vm1414_vm10 = vcmask 261120  }
  0xe6   : > { %v1934_v11 = vpack.c.bf16 %v1112_v9, %v1111_v8  ;;  %vm724_vm2 = vmand %vm686_vm13, %vm2378_vm9  ;;  %v759_v25 = vsel %vm723_vm15, %v2383_v23, 0.0  ;;  %vm2136_vm15 = vmmov 0  }
  0xe7   : > { %v760_v16 = vsel %vm724_vm2, %v2383_v23, 0.0  ;;  %v791_v12 = vadd.f32 %v759_v25, %v635_v15  ;;  %vm881_vm5 = vmand %vm843_vm14, %vm2458_vm8 }
  0xe8   : > { %1935 = vmatprep.subr.bf16.mxu0 %v1934_v11  ;;  %v792_v18 = vadd.f32 %v760_v16, %v636_v10  ;;  %vm882_vm4 = vmand %vm844_vm1, %vm2458_vm8  ;;  %v917_v22 = vsel %vm881_vm5, %v2445_v43, 0.0  ;;  %vm1215_vm8 = vcmask 31744  }
  0xe9   : > { %v918_v45 = vsel %vm882_vm4, %v2445_v43, 0.0  ;;  %v949_v13 = vadd.f32 %v917_v22, %v791_v12  ;;  %vm1027_vm9 = vmand %vm989_vm3, %vm2474_vm11  ;;  %v1187_v43 = vld [vmem:[%s3310_s3] sm:$0xff]  ;;  %vm1591_vm3 = vcmask 130048  }
  0xea   : > { %v950_v23 = vadd.f32 %v918_v45, %v792_v18  ;;  %vm1028_vm7 = vmand %vm990_vm6, %vm2474_vm11  ;;  %v1063_v14 = vsel %vm1027_vm9, %v2466_v48, 0.0  ;;  %1872 = vmatprep.mubr.msk.f32.mxu1 %vm1215_vm8, %v1187_v43  ;;  %vm1228_vm11 = vcmask 1043456   ;;  %v1516_v18 = vld [vmem:[%s3315_s8] sm:$0xff] }
  0xeb   : > { %v1064_v47 = vsel %vm1028_vm7, %v2466_v48, 0.0  ;;  %v1095_v17 = vadd.f32 %v1063_v14, %v949_v13  ;;  %v1193_v48 = vld [vmem:[%s3311_s4 + $0x10] sm:$0xff] }
  0xec   : > { %v1096_v20 = vadd.f32 %v1064_v47, %v950_v23  ;;  %1207 = vperm.xlu1 %2030, %v1193_v48  }
  0xee   : > { %v1936_v46 = vpack.c.bf16 %v1096_v20, %v1095_v17 }
  0xf0   : > { %1937 = vmatpush3.bf16.msra.mxu0 %v1936_v46  ;;  %1212 = vperm.xlu1 %2030, %v1194_v21  }
  0xf3   : > { %1182 = vmatmul.mubr.f32.vlgmr.msra.gmra.mrb[0].mxu0 %v2817_v19  ;;  %v1192_v19 = vld [vmem:[%s3311_s4 + $0x8] sm:$0xff] }
  0xf4   : > { %1202 = vperm.xlu0 %2029, %v1192_v19   ;;  %1505 = vperm.xlu1 %2030, %v1497_v26  }
  0xf8   : > { %1500 = vperm.xlu0 %2029, %v1496_v24  }
  0xfc   : > { %1668 = vperm.xlu0 %2029, %v1665_v27  }
 0x16b   : > { %v1208_v38 = vpop.permute.xlu1 %1207 }
 0x16f   : > { %v1213_v50 = vpop.permute.xlu1 %1212 }
 0x173   : > { %v1203_v39 = vpop.permute.xlu0 %1202  ;;  %v1506_v5 = vpop.permute.xlu1 %1505 }
 0x177   : > { %v1501_v7 = vpop.permute.xlu0 %1500 }
 0x17b   : > { %v1669_v47 = vpop.permute.xlu0 %1668 }
 0x1c6   : > { %v1848_v28 = vpop.f32.mrb[0].mxu0 }
 0x1c7   : > { %v1849_v29 = vpop.f32.mrb[1].mxu0 }
 0x1c8   : > { %v1850_v31 = vadd.f32 %v1849_v29, %v1848_v28 }
 0x1ca   : > { %1870 = vmatprep.subr.msk.mxu1 %vm1228_vm11, %v1850_v31 }
 0x1cb   : > { %1871 = vmatpush3.msk.msra.mxu1 %vm1228_vm11, %v1850_v31 }
 0x1cc   : > { %1873 = vmatmul.mubr.msk.f32.vlgmr.msra.gmra.mrb[0].mxu1 %vm1215_vm8, %v1188_v33  ;;  %1878 = vmatprep.subr.msk.mxu1 %vm1228_vm11, %v1850_v31 }
 0x1cd   : > { %1879 = vmatpush3.msk.msra.mxu1 %vm1228_vm11, %v1850_v31  ;;  %1875 = vmatprep.mubr.msk.f32.mxu1 %vm1215_vm8, %v1189_v0 }
 0x1d0   : > { %1876 = vmatmul.mubr.msk.f32.gmra.mrb[2].mxu1 %vm1215_vm8, %v1190_v34 }
 0x1d1   : > { %1880 = vmatprep.mubr.msk.f32.mxu1 %vm1215_vm8, %v1331_v35 }
 0x1d4   : > { %1881 = vmatmul.mubr.msk.f32.vlgmr.msra.gmra.mrb[4].mxu1 %vm1215_vm8, %v1332_v32 }
 0x1d5   : > { %1891 = vmatprep.mubr.msk.f32.mxu1 %vm1414_vm10, %v1329_v36 }
 0x29f   : > { %v1874_v40 = vpop.f32.mrb[0].mxu1 }
 0x2a0   : > { %v1304_v41 = vadd.f32 %v1874_v40, %v1203_v39  ;;  %v1298_v42 = vpop.f32.mrb[1].mxu1 }
 0x2a1   : > { %v1299_v44 = vadd.f32 %v1298_v42, %v1198_v37 }
 0x2a2   : > { %vm1318_vm12 = vcmp.ge.f32.partialorder %v1304_v41, 0.0  ;;  %v1322_v49 = vmul.f32 0.01, %v1304_v41 }
 0x2a3   : > { %vm1317_vm13 = vcmp.ge.f32.partialorder %v1299_v44, 0.0  ;;  %v1321_v51 = vmul.f32 0.01, %v1299_v44  ;;  %v1877_v55 = vpop.f32.mrb[2].mxu1 }
 0x2a4   : > { %v1314_v53 = vadd.f32 %v1877_v55, %v1213_v50  ;;  %v1308_v56 = vpop.f32.mrb[3].mxu1  ;;  %v1326_v57 = vsel %vm1318_vm12, %v1304_v41, %v1322_v49 }
 0x2a5   : > { %v1309_v52 = vadd.f32 %v1308_v56, %v1208_v38  ;;  %v1325_v58 = vsel %vm1317_vm13, %v1299_v44, %v1321_v51 }
 0x2a6   : > { %vm1320_vm0 = vcmp.ge.f32.partialorder %v1314_v53, 0.0  ;;  %v1324_v59 = vmul.f32 0.01, %v1314_v53  ;;  %v1938_v60 = vpack.c.bf16 %v1326_v57, %v1325_v58 }
 0x2a7   : > { %vm1319_vm14 = vcmp.ge.f32.partialorder %v1309_v52, 0.0  ;;  %v1323_v61 = vmul.f32 0.01, %v1309_v52 }
 0x2a8   : > { %1939 = vmatprep.subr.bf16.mxu1 %v1938_v60  ;;  %v1328_v62 = vsel %vm1320_vm0, %v1314_v53, %v1324_v59 }
 0x2a9   : > { %1941 = vmatpush3.bf16.msra.mxu1 %v1938_v60  ;;  %v1327_v63 = vsel %vm1319_vm14, %v1309_v52, %v1323_v61 }
 0x2aa   : > { %v1942_v1 = vpack.c.bf16 %v1328_v62, %v1327_v63 }
 0x2ac   : > { %1943 = vmatprep.subr.bf16.mxu1 %v1942_v1 }
 0x2ad   : > { %1945 = vmatpush3.bf16.msra.mxu1 %v1942_v1 }
 0x2ae   : > { %1894 = vmatprep.subr.mxu1 %v2135_v30 }
 0x2b0   : > { %1892 = vmatmul.mubr.msk.f32.vlgmr.msra.gmra.mrb[4].mxu1 %vm1414_vm10, %v1330_v2 }
 0x2b1   : > { %1895 = vmatpush3.msk.msra.mxu1 %vm1228_vm11, %v1850_v31  ;;  %1896 = vmatprep.mubr.msk.f32.mxu1 %vm2136_vm15, %v2135_v30 }
 0x2b2   : > { %1946 = vmatprep.subr.bf16.mxu1 %v2137_v4 }
 0x2b4   : > { %1897 = vmatmul.mubr.msk.f32.vlgmr.msra.gmra.mrb[6].mxu1 %vm1215_vm8, %v1517_v3 }
 0x2b5   : > { %1903 = vmatprep.mubr.msk.f32.mxu1 %vm2136_vm15, %v2135_v30 }
 0x383   : > { %v1893_v6 = vpop.f32.mrb[4].mxu1 }
 0x384   : > { %v1509_v8 = vadd.f32 %v1893_v6, %v1506_v5  ;;  %v1487_v9 = vpop.f32.mrb[5].mxu1 }
 0x385   : > { %v1508_v15 = vadd.f32 %v1501_v7, %v1487_v9 }
 0x386   : > { %vm1511_vm1 = vcmp.ge.f32.partialorder %v1509_v8, 0.0  ;;  %v1513_v10 = vmul.f32 0.01, %v1509_v8 }
 0x387   : > { %vm1510_vm2 = vcmp.ge.f32.partialorder %v1508_v15, 0.0  ;;  %v1512_v11 = vmul.f32 0.01, %v1508_v15  ;;  %v1587_v22 = vpop.f32.mrb[6].mxu1 }
 0x388   : > { %v1515_v25 = vsel %vm1511_vm1, %v1509_v8, %v1513_v10  ;;  %v1898_v45 = vpop.f32.mrb[7].mxu1 }
 0x389   : > { %v1514_v16 = vsel %vm1510_vm2, %v1508_v15, %v1512_v11 }
 0x38a   : > { %v1947_v12 = vpack.c.bf16 %v1515_v25, %v1514_v16 }
 0x38c   : > { %1948 = vmatpush3.bf16.msra.mxu1 %v1947_v12 }
 0x38f   : > { %1904 = vmatmul.mubr.msk.f32.vlgmr.msra.gmra.mrb[8].mxu1 %vm1591_vm3, %v1516_v18 }
 0x462   : > { %v1661_v13 = vpop.f32.mrb[8].mxu1 }
 0x463   : > { %v1662_v23 = vadd.f32 %v1661_v13, %v1587_v22  ;;  %v1905_v14 = vpop.f32.mrb[9].mxu1 }
 0x465   : > { %v1671_v17 = vadd.f32 %v1669_v47, %v1662_v23 }
 0x467   : > { %v1672_v20 = vmax.f32 %v1671_v17, 0.0 }
 0x469   : > { %1673 = vst [vmem:[%s428_s28] sm:$0xff] %v1672_v20 }
 0x46a   : > { %2062 = shalt.err (!%p2059_p3)
}
 0x46b   : > { %s2063_s26 = scalar_lea.hbm %s3260_s15, 128  ;;  %s2067_s28 = scalar_lea.hbm %s3318_s11, 256 }
 0x46c   : > { %p2064_p5 = scmp.ne.s32.totalorder %s3260_s15, %s2063_s26  ;;  %p2068_p9 = scmp.lt.u32.totalorder %s3260_s15, %s3318_s11 }
 0x46d   : > { %p2069_p12 = scmp.lt.u32.totalorder %s2067_s28, %s2063_s26  ;;  %p2071_p11 = scmp.lt.u32.totalorder %s2063_s26, %s3260_s15 }
 0x46e   : > { %p2065_p6 = pnand %p2064_p5, %p2239_p4 }
 0x46f   : > { %p2070_p10 = por %p2069_p12, %p2068_p9 }
 0x470   : > { %p2066_p7 = pneg %p2065_p6 }
 0x471   : > { %p2072_p13 = por %p2071_p11, %p2070_p10 }
 0x473   : > { %p2073_p0 = pnand %p2072_p13, %p2066_p7 }
 0x475   : > { %2076 = shalt.err (!%p2073_p0)
}
 0x476   : > { %1963 = dma.vmem_to_hbm [thread:$0]  (%p2239_p4), %s3262_s12, 128, %s3260_s15, %s1675_s16  }
 0x477 PF: > { %p1975_p1 = scmp.ge.s32.totalorder %s2131_s22, 2  ;;  %s1701_s24 = sand.u32 1, %s2111_s17  }
 0x478   : > { %s1702_s23 = scalar_lea.sflag [#allocation3], %s1701_s24 }
 0x479   : > { %p1970_p2 = pnand %p1975_p1, %p2246_p8 }
 0x47b   : > { %2106 = dma.done.wait (!%p1970_p2), %s1702_s23, 128  }
 0x47c   : > { %2108 = vsyncadd (!%p1970_p2), %s1702_s23, 4294967168  ;;  %s25_s22 = sadd.s32 1, %s2131_s22   ;;  %s3413_s20 = sld [smem:[#allocation8_spill]] }
 0x47d   : > { %p22_p3 = scmp.ge.s32.totalorder %s25_s22, 4   ;;  %s3414_s21 = sld [smem:[#allocation9_spill]] }
 0x47e   : > { %s3415_s17 = smov %s2115_s18  ;;  %s3416_s18 = smov %s2119_s19 }
 0x47f   : > { %s3417_s19 = smov %s2252_s30  ;;  %24 = sbr.rel (!%p22_p3) target bundleno = 7 (0x7), region = 107 }
 0x486   :  { %1707 = vsyncpa [#allocation3], 1 }
 0x487   :  { %1709 = vsyncpa [#allocation3 + $0x1], 1 }
 0x488   :  { %1710 = vsyncpa [#allocation4], 1 }
 0x489   :  { %1712 = vsyncpa [#allocation4 + $0x1], 1 }

</bundles_post_ra>
